<compile_context>
chip_gen: v7x
topology: tpu7x:2x2x1
jax: 0.10.0
libtpu: 0.0.40
codegen_flags: <defaults>
</compile_context>

<pallas_src>
import math

import numpy as np
import jax
import jax.numpy as jnp
from jax import lax
from jax.experimental import pallas as pl
from jax.experimental.pallas import tpu as pltpu

# Number of 8-row groups sorted concurrently inside the kernel (16 rows per
# sorted chunk). Keeps the live vreg set small while giving the scheduler
# several independent dependency chains.
_CHUNK_GROUPS = 2


def _wsd_kernel(z2_ref, z1_ref, out_ref):
    R, N = z2_ref.shape
    n_stages = int(math.log2(N))

    # --- Hoisted, row-group-invariant masks (all (8, N), one vreg/mask unit).
    lane = lax.broadcasted_iota(jnp.int32, (8, N), 1)
    sel = []        # per j: does roll-by-j deliver lane i^j at lane i?
    is_lower = []   # per j: is lane i the lower index of its (i, i^j) pair?
    for sub in range(n_stages):
        j = 1 << sub
        # Roll-sign-agnostic probe: one tiny (8,N) roll per distinct j only.
        sel.append(pltpu.roll(lane, j, 1) == (lane ^ j))
        is_lower.append((lane & j) == 0)

    G = R // 8
    acc = jnp.zeros((8, N), jnp.float32)

    g0 = 0
    while g0 < G:                     # static (trace-time) chunk loop
        gc = min(_CHUNK_GROUPS, G - g0)
        us = [z2_ref[pl.ds((g0 + g) * 8, 8), :].astype(jnp.float32)
              for g in range(gc)]
        vs = [z1_ref[pl.ds((g0 + g) * 8, 8), :].astype(jnp.float32)
              for g in range(gc)]

        # Bitonic sorting network over the lane axis (ascending full sort).
        for stage in range(1, n_stages + 1):
            k = 1 << stage
            last = (stage == n_stages)
            # Direction mask: computed once per stage, reused by its sub-steps.
            asc = None if last else ((lane & k) == 0)
            for sub in range(stage - 1, -1, -1):
                j = 1 << sub
                nj = N - j
                s_j = sel[sub]
                low_j = is_lower[sub]
                # Last stage: asc is constant-true -> take_min = is_lower.
                take_min = low_j if last else (asc == low_j)
                for g in range(gc):
                    u = us[g]
                    v = vs[g]
                    pu = jnp.where(s_j, pltpu.roll(u, j, 1),
                                   pltpu.roll(u, nj, 1))
                    pv = jnp.where(s_j, pltpu.roll(v, j, 1),
                                   pltpu.roll(v, nj, 1))
                    us[g] = jnp.where(take_min, jnp.minimum(u, pu),
                                      jnp.maximum(u, pu))
                    vs[g] = jnp.where(take_min, jnp.minimum(v, pv),
                                      jnp.maximum(v, pv))

        for g in range(gc):
            acc = acc + jnp.abs(us[g] - vs[g])
        g0 += gc

    # Lane-dense (8, N) partial-sum slab (unmasked vst).
    out_ref[...] = acc


def _pick_tile_rows(L, cap=64):
    """Fixed tile height (multiple of 8/16), independent of the divisors of L.

    Aims for >= 2 grid steps whenever L > 8 so the parallel grid axis can be
    sharded across both v7x TensorCores; caps at 64 rows (DMA amortization is
    already ample, and compute per tile stays well within the vreg budget
    thanks to in-kernel sub-chunking).
    """
    if L <= 16:
        return 8
    half = (L + 1) // 2
    tr = ((half + 15) // 16) * 16
    return min(cap, tr)


def wsd(z2, z1, *, tile_rows=None):
    """1 - mean_i W1(z2[i], z1[i]) over rows (the WSD.forward loss)."""
    z2 = jnp.asarray(z2, jnp.float32)
    z1 = jnp.asarray(z1, jnp.float32)
    L, N = z2.shape
    assert z1.shape == (L, N)
    assert N >= 2 and (N & (N - 1)) == 0, "N must be a power of two"
    # TODO(synk): non-power-of-two sample counts would need a padded/merge sort.

    if tile_rows is None:
        tile_rows = _pick_tile_rows(L)
    assert tile_rows % 8 == 0

    # Pad rows up to a multiple of tile_rows with identical (zero) rows in both
    # inputs: |sort(0) - sort(0)| == 0, so padded rows contribute nothing.
    L_pad = pl.cdiv(L, tile_rows) * tile_rows
    if L_pad != L:
        z2 = jnp.pad(z2, ((0, L_pad - L), (0, 0)))
        z1 = jnp.pad(z1, ((0, L_pad - L), (0, 0)))
    num_tiles = L_pad // tile_rows

    partials = pl.pallas_call(
        _wsd_kernel,
        out_shape=jax.ShapeDtypeStruct((num_tiles * 8, N), jnp.float32),
        grid_spec=pltpu.PrefetchScalarGridSpec(
            num_scalar_prefetch=0,
            grid=(num_tiles,),
            in_specs=[
                pl.BlockSpec((tile_rows, N), lambda i: (i, 0)),
                pl.BlockSpec((tile_rows, N), lambda i: (i, 0)),
            ],
            out_specs=pl.BlockSpec((8, N), lambda i: (i, 0)),
        ),
        compiler_params=pltpu.CompilerParams(
            dimension_semantics=("parallel",)),
    )(z2, z1)

    # Final reduction: single fused scale by 1/(L*N), then 1 - mean.
    return 1.0 - partials.sum() * (1.0 / (L * N))


if __name__ == "__main__":
    key = jax.random.PRNGKey(0)
    k1, k2 = jax.random.split(key)
    L, N = 16, 128
    z2 = jax.random.normal(k1, (L, N), dtype=jnp.float32)
    z1 = jax.random.normal(k2, (L, N), dtype=jnp.float32) * 0.5 + 0.3

    out = wsd(z2, z1)
    jax.block_until_ready(out)

    # Pure-numpy reference: scipy.stats.wasserstein_distance for equal-size,
    # equally-weighted 1-D samples == mean |sorted(u) - sorted(v)|.
    u = np.sort(np.asarray(z2), axis=1)
    v = np.sort(np.asarray(z1), axis=1)
    ref = 1.0 - float(np.mean(np.abs(u - v)))
    np.testing.assert_allclose(float(out), ref, rtol=1e-5, atol=1e-5)

    print("KERNEL_OK")
</pallas_src>

<mosaic_0001>
module attributes {stable_mosaic.version = 11 : i64} {
  func.func @_wsd_kernel(%arg0: i32, %arg1: memref<8x128xf32, #tpu.memory_space<vmem>>, %arg2: memref<8x128xf32, #tpu.memory_space<vmem>>, %arg3: memref<8x128xf32, #tpu.memory_space<vmem>>) attributes {dimension_semantics = [#tpu.dimension_semantics<parallel>], iteration_bounds = array<i64: 2>, scalar_prefetch = 0 : i64, scratch_operands = 0 : i64, tpu.core_type = #tpu.core_type<tc>, window_params = [{transform_indices = @transform_0, window_bounds = array<i64: 8, 128>}, {transform_indices = @transform_1, window_bounds = array<i64: 8, 128>}, {transform_indices = @transform_2, window_bounds = array<i64: 8, 128>}]} {
    %0 = tpu.iota {dimensions = array<i32: 1>} : vector<8x128xi32>
    %c1_i32 = arith.constant 1 : i32
    %1 = tpu.dynamic_rotate %0 by %c1_i32 dim 1 : vector<8x128xi32>, i32 -> vector<8x128xi32>
    %c1_i32_0 = arith.constant 1 : i32
    %2 = vector.broadcast %c1_i32_0 : i32 to vector<8x128xi32>
    %3 = arith.xori %0, %2 : vector<8x128xi32>
    %4 = arith.cmpi eq, %1, %3 : vector<8x128xi32>
    %c1_i32_1 = arith.constant 1 : i32
    %5 = vector.broadcast %c1_i32_1 : i32 to vector<8x128xi32>
    %6 = arith.andi %0, %5 : vector<8x128xi32>
    %c0_i32 = arith.constant 0 : i32
    %7 = vector.broadcast %c0_i32 : i32 to vector<8x128xi32>
    %8 = arith.cmpi eq, %6, %7 : vector<8x128xi32>
    %c2_i32 = arith.constant 2 : i32
    %9 = tpu.dynamic_rotate %0 by %c2_i32 dim 1 : vector<8x128xi32>, i32 -> vector<8x128xi32>
    %c2_i32_2 = arith.constant 2 : i32
    %10 = vector.broadcast %c2_i32_2 : i32 to vector<8x128xi32>
    %11 = arith.xori %0, %10 : vector<8x128xi32>
    %12 = arith.cmpi eq, %9, %11 : vector<8x128xi32>
    %c2_i32_3 = arith.constant 2 : i32
    %13 = vector.broadcast %c2_i32_3 : i32 to vector<8x128xi32>
    %14 = arith.andi %0, %13 : vector<8x128xi32>
    %c0_i32_4 = arith.constant 0 : i32
    %15 = vector.broadcast %c0_i32_4 : i32 to vector<8x128xi32>
    %16 = arith.cmpi eq, %14, %15 : vector<8x128xi32>
    %c4_i32 = arith.constant 4 : i32
    %17 = tpu.dynamic_rotate %0 by %c4_i32 dim 1 : vector<8x128xi32>, i32 -> vector<8x128xi32>
    %c4_i32_5 = arith.constant 4 : i32
    %18 = vector.broadcast %c4_i32_5 : i32 to vector<8x128xi32>
    %19 = arith.xori %0, %18 : vector<8x128xi32>
    %20 = arith.cmpi eq, %17, %19 : vector<8x128xi32>
    %c4_i32_6 = arith.constant 4 : i32
    %21 = vector.broadcast %c4_i32_6 : i32 to vector<8x128xi32>
    %22 = arith.andi %0, %21 : vector<8x128xi32>
    %c0_i32_7 = arith.constant 0 : i32
    %23 = vector.broadcast %c0_i32_7 : i32 to vector<8x128xi32>
    %24 = arith.cmpi eq, %22, %23 : vector<8x128xi32>
    %c8_i32 = arith.constant 8 : i32
    %25 = tpu.dynamic_rotate %0 by %c8_i32 dim 1 : vector<8x128xi32>, i32 -> vector<8x128xi32>
    %c8_i32_8 = arith.constant 8 : i32
    %26 = vector.broadcast %c8_i32_8 : i32 to vector<8x128xi32>
    %27 = arith.xori %0, %26 : vector<8x128xi32>
    %28 = arith.cmpi eq, %25, %27 : vector<8x128xi32>
    %c8_i32_9 = arith.constant 8 : i32
    %29 = vector.broadcast %c8_i32_9 : i32 to vector<8x128xi32>
    %30 = arith.andi %0, %29 : vector<8x128xi32>
    %c0_i32_10 = arith.constant 0 : i32
    %31 = vector.broadcast %c0_i32_10 : i32 to vector<8x128xi32>
    %32 = arith.cmpi eq, %30, %31 : vector<8x128xi32>
    %c16_i32 = arith.constant 16 : i32
    %33 = tpu.dynamic_rotate %0 by %c16_i32 dim 1 : vector<8x128xi32>, i32 -> vector<8x128xi32>
    %c16_i32_11 = arith.constant 16 : i32
    %34 = vector.broadcast %c16_i32_11 : i32 to vector<8x128xi32>
    %35 = arith.xori %0, %34 : vector<8x128xi32>
    %36 = arith.cmpi eq, %33, %35 : vector<8x128xi32>
    %c16_i32_12 = arith.constant 16 : i32
    %37 = vector.broadcast %c16_i32_12 : i32 to vector<8x128xi32>
    %38 = arith.andi %0, %37 : vector<8x128xi32>
    %c0_i32_13 = arith.constant 0 : i32
    %39 = vector.broadcast %c0_i32_13 : i32 to vector<8x128xi32>
    %40 = arith.cmpi eq, %38, %39 : vector<8x128xi32>
    %c32_i32 = arith.constant 32 : i32
    %41 = tpu.dynamic_rotate %0 by %c32_i32 dim 1 : vector<8x128xi32>, i32 -> vector<8x128xi32>
    %c32_i32_14 = arith.constant 32 : i32
    %42 = vector.broadcast %c32_i32_14 : i32 to vector<8x128xi32>
    %43 = arith.xori %0, %42 : vector<8x128xi32>
    %44 = arith.cmpi eq, %41, %43 : vector<8x128xi32>
    %c32_i32_15 = arith.constant 32 : i32
    %45 = vector.broadcast %c32_i32_15 : i32 to vector<8x128xi32>
    %46 = arith.andi %0, %45 : vector<8x128xi32>
    %c0_i32_16 = arith.constant 0 : i32
    %47 = vector.broadcast %c0_i32_16 : i32 to vector<8x128xi32>
    %48 = arith.cmpi eq, %46, %47 : vector<8x128xi32>
    %c64_i32 = arith.constant 64 : i32
    %49 = tpu.dynamic_rotate %0 by %c64_i32 dim 1 : vector<8x128xi32>, i32 -> vector<8x128xi32>
    %c64_i32_17 = arith.constant 64 : i32
    %50 = vector.broadcast %c64_i32_17 : i32 to vector<8x128xi32>
    %51 = arith.xori %0, %50 : vector<8x128xi32>
    %52 = arith.cmpi eq, %49, %51 : vector<8x128xi32>
    %c64_i32_18 = arith.constant 64 : i32
    %53 = vector.broadcast %c64_i32_18 : i32 to vector<8x128xi32>
    %54 = arith.andi %0, %53 : vector<8x128xi32>
    %c0_i32_19 = arith.constant 0 : i32
    %55 = vector.broadcast %c0_i32_19 : i32 to vector<8x128xi32>
    %56 = arith.cmpi eq, %54, %55 : vector<8x128xi32>
    %cst = arith.constant 0.000000e+00 : f32
    %57 = vector.broadcast %cst : f32 to vector<8x128xf32>
    %c0 = arith.constant 0 : index
    %c0_20 = arith.constant 0 : index
    %58 = vector.load %arg1[%c0, %c0_20] : memref<8x128xf32, #tpu.memory_space<vmem>>, vector<8x128xf32>
    %c0_21 = arith.constant 0 : index
    %c0_22 = arith.constant 0 : index
    %59 = vector.load %arg2[%c0_21, %c0_22] : memref<8x128xf32, #tpu.memory_space<vmem>>, vector<8x128xf32>
    %c2_i32_23 = arith.constant 2 : i32
    %60 = vector.broadcast %c2_i32_23 : i32 to vector<8x128xi32>
    %61 = arith.andi %0, %60 : vector<8x128xi32>
    %c0_i32_24 = arith.constant 0 : i32
    %62 = vector.broadcast %c0_i32_24 : i32 to vector<8x128xi32>
    %63 = arith.cmpi eq, %61, %62 : vector<8x128xi32>
    %64 = arith.xori %63, %8 : vector<8x128xi1>
    %cst_25 = arith.constant dense<true> : vector<8x128xi1>
    %65 = arith.xori %64, %cst_25 : vector<8x128xi1>
    %c1_i32_26 = arith.constant 1 : i32
    %66 = tpu.dynamic_rotate %58 by %c1_i32_26 dim 1 : vector<8x128xf32>, i32 -> vector<8x128xf32>
    %c127_i32 = arith.constant 127 : i32
    %67 = tpu.dynamic_rotate %58 by %c127_i32 dim 1 : vector<8x128xf32>, i32 -> vector<8x128xf32>
    %68 = arith.select %4, %66, %67 : vector<8x128xi1>, vector<8x128xf32>
    %c1_i32_27 = arith.constant 1 : i32
    %69 = tpu.dynamic_rotate %59 by %c1_i32_27 dim 1 : vector<8x128xf32>, i32 -> vector<8x128xf32>
    %c127_i32_28 = arith.constant 127 : i32
    %70 = tpu.dynamic_rotate %59 by %c127_i32_28 dim 1 : vector<8x128xf32>, i32 -> vector<8x128xf32>
    %71 = arith.select %4, %69, %70 : vector<8x128xi1>, vector<8x128xf32>
    %72 = arith.minimumf %58, %68 : vector<8x128xf32>
    %73 = arith.maximumf %58, %68 : vector<8x128xf32>
    %74 = arith.select %65, %72, %73 : vector<8x128xi1>, vector<8x128xf32>
    %75 = arith.minimumf %59, %71 : vector<8x128xf32>
    %76 = arith.maximumf %59, %71 : vector<8x128xf32>
    %77 = arith.select %65, %75, %76 : vector<8x128xi1>, vector<8x128xf32>
    %c4_i32_29 = arith.constant 4 : i32
    %78 = vector.broadcast %c4_i32_29 : i32 to vector<8x128xi32>
    %79 = arith.andi %0, %78 : vector<8x128xi32>
    %c0_i32_30 = arith.constant 0 : i32
    %80 = vector.broadcast %c0_i32_30 : i32 to vector<8x128xi32>
    %81 = arith.cmpi eq, %79, %80 : vector<8x128xi32>
    %82 = arith.xori %81, %16 : vector<8x128xi1>
    %cst_31 = arith.constant dense<true> : vector<8x128xi1>
    %83 = arith.xori %82, %cst_31 : vector<8x128xi1>
    %c2_i32_32 = arith.constant 2 : i32
    %84 = tpu.dynamic_rotate %74 by %c2_i32_32 dim 1 : vector<8x128xf32>, i32 -> vector<8x128xf32>
    %c126_i32 = arith.constant 126 : i32
    %85 = tpu.dynamic_rotate %74 by %c126_i32 dim 1 : vector<8x128xf32>, i32 -> vector<8x128xf32>
    %86 = arith.select %12, %84, %85 : vector<8x128xi1>, vector<8x128xf32>
    %c2_i32_33 = arith.constant 2 : i32
    %87 = tpu.dynamic_rotate %77 by %c2_i32_33 dim 1 : vector<8x128xf32>, i32 -> vector<8x128xf32>
    %c126_i32_34 = arith.constant 126 : i32
    %88 = tpu.dynamic_rotate %77 by %c126_i32_34 dim 1 : vector<8x128xf32>, i32 -> vector<8x128xf32>
    %89 = arith.select %12, %87, %88 : vector<8x128xi1>, vector<8x128xf32>
    %90 = arith.minimumf %74, %86 : vector<8x128xf32>
    %91 = arith.maximumf %74, %86 : vector<8x128xf32>
    %92 = arith.select %83, %90, %91 : vector<8x128xi1>, vector<8x128xf32>
    %93 = arith.minimumf %77, %89 : vector<8x128xf32>
    %94 = arith.maximumf %77, %89 : vector<8x128xf32>
    %95 = arith.select %83, %93, %94 : vector<8x128xi1>, vector<8x128xf32>
    %96 = arith.xori %81, %8 : vector<8x128xi1>
    %cst_35 = arith.constant dense<true> : vector<8x128xi1>
    %97 = arith.xori %96, %cst_35 : vector<8x128xi1>
    %c1_i32_36 = arith.constant 1 : i32
    %98 = tpu.dynamic_rotate %92 by %c1_i32_36 dim 1 : vector<8x128xf32>, i32 -> vector<8x128xf32>
    %c127_i32_37 = arith.constant 127 : i32
    %99 = tpu.dynamic_rotate %92 by %c127_i32_37 dim 1 : vector<8x128xf32>, i32 -> vector<8x128xf32>
    %100 = arith.select %4, %98, %99 : vector<8x128xi1>, vector<8x128xf32>
    %c1_i32_38 = arith.constant 1 : i32
    %101 = tpu.dynamic_rotate %95 by %c1_i32_38 dim 1 : vector<8x128xf32>, i32 -> vector<8x128xf32>
    %c127_i32_39 = arith.constant 127 : i32
    %102 = tpu.dynamic_rotate %95 by %c127_i32_39 dim 1 : vector<8x128xf32>, i32 -> vector<8x128xf32>
    %103 = arith.select %4, %101, %102 : vector<8x128xi1>, vector<8x128xf32>
    %104 = arith.minimumf %92, %100 : vector<8x128xf32>
    %105 = arith.maximumf %92, %100 : vector<8x128xf32>
    %106 = arith.select %97, %104, %105 : vector<8x128xi1>, vector<8x128xf32>
    %107 = arith.minimumf %95, %103 : vector<8x128xf32>
    %108 = arith.maximumf %95, %103 : vector<8x128xf32>
    %109 = arith.select %97, %107, %108 : vector<8x128xi1>, vector<8x128xf32>
    %c8_i32_40 = arith.constant 8 : i32
    %110 = vector.broadcast %c8_i32_40 : i32 to vector<8x128xi32>
    %111 = arith.andi %0, %110 : vector<8x128xi32>
    %c0_i32_41 = arith.constant 0 : i32
    %112 = vector.broadcast %c0_i32_41 : i32 to vector<8x128xi32>
    %113 = arith.cmpi eq, %111, %112 : vector<8x128xi32>
    %114 = arith.xori %113, %24 : vector<8x128xi1>
    %cst_42 = arith.constant dense<true> : vector<8x128xi1>
    %115 = arith.xori %114, %cst_42 : vector<8x128xi1>
    %c4_i32_43 = arith.constant 4 : i32
    %116 = tpu.dynamic_rotate %106 by %c4_i32_43 dim 1 : vector<8x128xf32>, i32 -> vector<8x128xf32>
    %c124_i32 = arith.constant 124 : i32
    %117 = tpu.dynamic_rotate %106 by %c124_i32 dim 1 : vector<8x128xf32>, i32 -> vector<8x128xf32>
    %118 = arith.select %20, %116, %117 : vector<8x128xi1>, vector<8x128xf32>
    %c4_i32_44 = arith.constant 4 : i32
    %119 = tpu.dynamic_rotate %109 by %c4_i32_44 dim 1 : vector<8x128xf32>, i32 -> vector<8x128xf32>
    %c124_i32_45 = arith.constant 124 : i32
    %120 = tpu.dynamic_rotate %109 by %c124_i32_45 dim 1 : vector<8x128xf32>, i32 -> vector<8x128xf32>
    %121 = arith.select %20, %119, %120 : vector<8x128xi1>, vector<8x128xf32>
    %122 = arith.minimumf %106, %118 : vector<8x128xf32>
    %123 = arith.maximumf %106, %118 : vector<8x128xf32>
    %124 = arith.select %115, %122, %123 : vector<8x128xi1>, vector<8x128xf32>
    %125 = arith.minimumf %109, %121 : vector<8x128xf32>
    %126 = arith.maximumf %109, %121 : vector<8x128xf32>
    %127 = arith.select %115, %125, %126 : vector<8x128xi1>, vector<8x128xf32>
    %128 = arith.xori %113, %16 : vector<8x128xi1>
    %cst_46 = arith.constant dense<true> : vector<8x128xi1>
    %129 = arith.xori %128, %cst_46 : vector<8x128xi1>
    %c2_i32_47 = arith.constant 2 : i32
    %130 = tpu.dynamic_rotate %124 by %c2_i32_47 dim 1 : vector<8x128xf32>, i32 -> vector<8x128xf32>
    %c126_i32_48 = arith.constant 126 : i32
    %131 = tpu.dynamic_rotate %124 by %c126_i32_48 dim 1 : vector<8x128xf32>, i32 -> vector<8x128xf32>
    %132 = arith.select %12, %130, %131 : vector<8x128xi1>, vector<8x128xf32>
    %c2_i32_49 = arith.constant 2 : i32
    %133 = tpu.dynamic_rotate %127 by %c2_i32_49 dim 1 : vector<8x128xf32>, i32 -> vector<8x128xf32>
    %c126_i32_50 = arith.constant 126 : i32
    %134 = tpu.dynamic_rotate %127 by %c126_i32_50 dim 1 : vector<8x128xf32>, i32 -> vector<8x128xf32>
    %135 = arith.select %12, %133, %134 : vector<8x128xi1>, vector<8x128xf32>
    %136 = arith.minimumf %124, %132 : vector<8x128xf32>
    %137 = arith.maximumf %124, %132 : vector<8x128xf32>
    %138 = arith.select %129, %136, %137 : vector<8x128xi1>, vector<8x128xf32>
    %139 = arith.minimumf %127, %135 : vector<8x128xf32>
    %140 = arith.maximumf %127, %135 : vector<8x128xf32>
    %141 = arith.select %129, %139, %140 : vector<8x128xi1>, vector<8x128xf32>
    %142 = arith.xori %113, %8 : vector<8x128xi1>
    %cst_51 = arith.constant dense<true> : vector<8x128xi1>
    %143 = arith.xori %142, %cst_51 : vector<8x128xi1>
    %c1_i32_52 = arith.constant 1 : i32
    %144 = tpu.dynamic_rotate %138 by %c1_i32_52 dim 1 : vector<8x128xf32>, i32 -> vector<8x128xf32>
    %c127_i32_53 = arith.constant 127 : i32
    %145 = tpu.dynamic_rotate %138 by %c127_i32_53 dim 1 : vector<8x128xf32>, i32 -> vector<8x128xf32>
    %146 = arith.select %4, %144, %145 : vector<8x128xi1>, vector<8x128xf32>
    %c1_i32_54 = arith.constant 1 : i32
    %147 = tpu.dynamic_rotate %141 by %c1_i32_54 dim 1 : vector<8x128xf32>, i32 -> vector<8x128xf32>
    %c127_i32_55 = arith.constant 127 : i32
    %148 = tpu.dynamic_rotate %141 by %c127_i32_55 dim 1 : vector<8x128xf32>, i32 -> vector<8x128xf32>
    %149 = arith.select %4, %147, %148 : vector<8x128xi1>, vector<8x128xf32>
    %150 = arith.minimumf %138, %146 : vector<8x128xf32>
    %151 = arith.maximumf %138, %146 : vector<8x128xf32>
    %152 = arith.select %143, %150, %151 : vector<8x128xi1>, vector<8x128xf32>
    %153 = arith.minimumf %141, %149 : vector<8x128xf32>
    %154 = arith.maximumf %141, %149 : vector<8x128xf32>
    %155 = arith.select %143, %153, %154 : vector<8x128xi1>, vector<8x128xf32>
    %c16_i32_56 = arith.constant 16 : i32
    %156 = vector.broadcast %c16_i32_56 : i32 to vector<8x128xi32>
    %157 = arith.andi %0, %156 : vector<8x128xi32>
    %c0_i32_57 = arith.constant 0 : i32
    %158 = vector.broadcast %c0_i32_57 : i32 to vector<8x128xi32>
    %159 = arith.cmpi eq, %157, %158 : vector<8x128xi32>
    %160 = arith.xori %159, %32 : vector<8x128xi1>
    %cst_58 = arith.constant dense<true> : vector<8x128xi1>
    %161 = arith.xori %160, %cst_58 : vector<8x128xi1>
    %c8_i32_59 = arith.constant 8 : i32
    %162 = tpu.dynamic_rotate %152 by %c8_i32_59 dim 1 : vector<8x128xf32>, i32 -> vector<8x128xf32>
    %c120_i32 = arith.constant 120 : i32
    %163 = tpu.dynamic_rotate %152 by %c120_i32 dim 1 : vector<8x128xf32>, i32 -> vector<8x128xf32>
    %164 = arith.select %28, %162, %163 : vector<8x128xi1>, vector<8x128xf32>
    %c8_i32_60 = arith.constant 8 : i32
    %165 = tpu.dynamic_rotate %155 by %c8_i32_60 dim 1 : vector<8x128xf32>, i32 -> vector<8x128xf32>
    %c120_i32_61 = arith.constant 120 : i32
    %166 = tpu.dynamic_rotate %155 by %c120_i32_61 dim 1 : vector<8x128xf32>, i32 -> vector<8x128xf32>
    %167 = arith.select %28, %165, %166 : vector<8x128xi1>, vector<8x128xf32>
    %168 = arith.minimumf %152, %164 : vector<8x128xf32>
    %169 = arith.maximumf %152, %164 : vector<8x128xf32>
    %170 = arith.select %161, %168, %169 : vector<8x128xi1>, vector<8x128xf32>
    %171 = arith.minimumf %155, %167 : vector<8x128xf32>
    %172 = arith.maximumf %155, %167 : vector<8x128xf32>
    %173 = arith.select %161, %171, %172 : vector<8x128xi1>, vector<8x128xf32>
    %174 = arith.xori %159, %24 : vector<8x128xi1>
    %cst_62 = arith.constant dense<true> : vector<8x128xi1>
    %175 = arith.xori %174, %cst_62 : vector<8x128xi1>
    %c4_i32_63 = arith.constant 4 : i32
    %176 = tpu.dynamic_rotate %170 by %c4_i32_63 dim 1 : vector<8x128xf32>, i32 -> vector<8x128xf32>
    %c124_i32_64 = arith.constant 124 : i32
    %177 = tpu.dynamic_rotate %170 by %c124_i32_64 dim 1 : vector<8x128xf32>, i32 -> vector<8x128xf32>
    %178 = arith.select %20, %176, %177 : vector<8x128xi1>, vector<8x128xf32>
    %c4_i32_65 = arith.constant 4 : i32
    %179 = tpu.dynamic_rotate %173 by %c4_i32_65 dim 1 : vector<8x128xf32>, i32 -> vector<8x128xf32>
    %c124_i32_66 = arith.constant 124 : i32
    %180 = tpu.dynamic_rotate %173 by %c124_i32_66 dim 1 : vector<8x128xf32>, i32 -> vector<8x128xf32>
    %181 = arith.select %20, %179, %180 : vector<8x128xi1>, vector<8x128xf32>
    %182 = arith.minimumf %170, %178 : vector<8x128xf32>
    %183 = arith.maximumf %170, %178 : vector<8x128xf32>
    %184 = arith.select %175, %182, %183 : vector<8x128xi1>, vector<8x128xf32>
    %185 = arith.minimumf %173, %181 : vector<8x128xf32>
    %186 = arith.maximumf %173, %181 : vector<8x128xf32>
    %187 = arith.select %175, %185, %186 : vector<8x128xi1>, vector<8x128xf32>
    %188 = arith.xori %159, %16 : vector<8x128xi1>
    %cst_67 = arith.constant dense<true> : vector<8x128xi1>
    %189 = arith.xori %188, %cst_67 : vector<8x128xi1>
    %c2_i32_68 = arith.constant 2 : i32
    %190 = tpu.dynamic_rotate %184 by %c2_i32_68 dim 1 : vector<8x128xf32>, i32 -> vector<8x128xf32>
    %c126_i32_69 = arith.constant 126 : i32
    %191 = tpu.dynamic_rotate %184 by %c126_i32_69 dim 1 : vector<8x128xf32>, i32 -> vector<8x128xf32>
    %192 = arith.select %12, %190, %191 : vector<8x128xi1>, vector<8x128xf32>
    %c2_i32_70 = arith.constant 2 : i32
    %193 = tpu.dynamic_rotate %187 by %c2_i32_70 dim 1 : vector<8x128xf32>, i32 -> vector<8x128xf32>
    %c126_i32_71 = arith.constant 126 : i32
    %194 = tpu.dynamic_rotate %187 by %c126_i32_71 dim 1 : vector<8x128xf32>, i32 -> vector<8x128xf32>
    %195 = arith.select %12, %193, %194 : vector<8x128xi1>, vector<8x128xf32>
    %196 = arith.minimumf %184, %192 : vector<8x128xf32>
    %197 = arith.maximumf %184, %192 : vector<8x128xf32>
    %198 = arith.select %189, %196, %197 : vector<8x128xi1>, vector<8x128xf32>
    %199 = arith.minimumf %187, %195 : vector<8x128xf32>
    %200 = arith.maximumf %187, %195 : vector<8x128xf32>
    %201 = arith.select %189, %199, %200 : vector<8x128xi1>, vector<8x128xf32>
    %202 = arith.xori %159, %8 : vector<8x128xi1>
    %cst_72 = arith.constant dense<true> : vector<8x128xi1>
    %203 = arith.xori %202, %cst_72 : vector<8x128xi1>
    %c1_i32_73 = arith.constant 1 : i32
    %204 = tpu.dynamic_rotate %198 by %c1_i32_73 dim 1 : vector<8x128xf32>, i32 -> vector<8x128xf32>
    %c127_i32_74 = arith.constant 127 : i32
    %205 = tpu.dynamic_rotate %198 by %c127_i32_74 dim 1 : vector<8x128xf32>, i32 -> vector<8x128xf32>
    %206 = arith.select %4, %204, %205 : vector<8x128xi1>, vector<8x128xf32>
    %c1_i32_75 = arith.constant 1 : i32
    %207 = tpu.dynamic_rotate %201 by %c1_i32_75 dim 1 : vector<8x128xf32>, i32 -> vector<8x128xf32>
    %c127_i32_76 = arith.constant 127 : i32
    %208 = tpu.dynamic_rotate %201 by %c127_i32_76 dim 1 : vector<8x128xf32>, i32 -> vector<8x128xf32>
    %209 = arith.select %4, %207, %208 : vector<8x128xi1>, vector<8x128xf32>
    %210 = arith.minimumf %198, %206 : vector<8x128xf32>
    %211 = arith.maximumf %198, %206 : vector<8x128xf32>
    %212 = arith.select %203, %210, %211 : vector<8x128xi1>, vector<8x128xf32>
    %213 = arith.minimumf %201, %209 : vector<8x128xf32>
    %214 = arith.maximumf %201, %209 : vector<8x128xf32>
    %215 = arith.select %203, %213, %214 : vector<8x128xi1>, vector<8x128xf32>
    %c32_i32_77 = arith.constant 32 : i32
    %216 = vector.broadcast %c32_i32_77 : i32 to vector<8x128xi32>
    %217 = arith.andi %0, %216 : vector<8x128xi32>
    %c0_i32_78 = arith.constant 0 : i32
    %218 = vector.broadcast %c0_i32_78 : i32 to vector<8x128xi32>
    %219 = arith.cmpi eq, %217, %218 : vector<8x128xi32>
    %220 = arith.xori %219, %40 : vector<8x128xi1>
    %cst_79 = arith.constant dense<true> : vector<8x128xi1>
    %221 = arith.xori %220, %cst_79 : vector<8x128xi1>
    %c16_i32_80 = arith.constant 16 : i32
    %222 = tpu.dynamic_rotate %212 by %c16_i32_80 dim 1 : vector<8x128xf32>, i32 -> vector<8x128xf32>
    %c112_i32 = arith.constant 112 : i32
    %223 = tpu.dynamic_rotate %212 by %c112_i32 dim 1 : vector<8x128xf32>, i32 -> vector<8x128xf32>
    %224 = arith.select %36, %222, %223 : vector<8x128xi1>, vector<8x128xf32>
    %c16_i32_81 = arith.constant 16 : i32
    %225 = tpu.dynamic_rotate %215 by %c16_i32_81 dim 1 : vector<8x128xf32>, i32 -> vector<8x128xf32>
    %c112_i32_82 = arith.constant 112 : i32
    %226 = tpu.dynamic_rotate %215 by %c112_i32_82 dim 1 : vector<8x128xf32>, i32 -> vector<8x128xf32>
    %227 = arith.select %36, %225, %226 : vector<8x128xi1>, vector<8x128xf32>
    %228 = arith.minimumf %212, %224 : vector<8x128xf32>
    %229 = arith.maximumf %212, %224 : vector<8x128xf32>
    %230 = arith.select %221, %228, %229 : vector<8x128xi1>, vector<8x128xf32>
    %231 = arith.minimumf %215, %227 : vector<8x128xf32>
    %232 = arith.maximumf %215, %227 : vector<8x128xf32>
    %233 = arith.select %221, %231, %232 : vector<8x128xi1>, vector<8x128xf32>
    %234 = arith.xori %219, %32 : vector<8x128xi1>
    %cst_83 = arith.constant dense<true> : vector<8x128xi1>
    %235 = arith.xori %234, %cst_83 : vector<8x128xi1>
    %c8_i32_84 = arith.constant 8 : i32
    %236 = tpu.dynamic_rotate %230 by %c8_i32_84 dim 1 : vector<8x128xf32>, i32 -> vector<8x128xf32>
    %c120_i32_85 = arith.constant 120 : i32
    %237 = tpu.dynamic_rotate %230 by %c120_i32_85 dim 1 : vector<8x128xf32>, i32 -> vector<8x128xf32>
    %238 = arith.select %28, %236, %237 : vector<8x128xi1>, vector<8x128xf32>
    %c8_i32_86 = arith.constant 8 : i32
    %239 = tpu.dynamic_rotate %233 by %c8_i32_86 dim 1 : vector<8x128xf32>, i32 -> vector<8x128xf32>
    %c120_i32_87 = arith.constant 120 : i32
    %240 = tpu.dynamic_rotate %233 by %c120_i32_87 dim 1 : vector<8x128xf32>, i32 -> vector<8x128xf32>
    %241 = arith.select %28, %239, %240 : vector<8x128xi1>, vector<8x128xf32>
    %242 = arith.minimumf %230, %238 : vector<8x128xf32>
    %243 = arith.maximumf %230, %238 : vector<8x128xf32>
    %244 = arith.select %235, %242, %243 : vector<8x128xi1>, vector<8x128xf32>
    %245 = arith.minimumf %233, %241 : vector<8x128xf32>
    %246 = arith.maximumf %233, %241 : vector<8x128xf32>
    %247 = arith.select %235, %245, %246 : vector<8x128xi1>, vector<8x128xf32>
    %248 = arith.xori %219, %24 : vector<8x128xi1>
    %cst_88 = arith.constant dense<true> : vector<8x128xi1>
    %249 = arith.xori %248, %cst_88 : vector<8x128xi1>
    %c4_i32_89 = arith.constant 4 : i32
    %250 = tpu.dynamic_rotate %244 by %c4_i32_89 dim 1 : vector<8x128xf32>, i32 -> vector<8x128xf32>
    %c124_i32_90 = arith.constant 124 : i32
    %251 = tpu.dynamic_rotate %244 by %c124_i32_90 dim 1 : vector<8x128xf32>, i32 -> vector<8x128xf32>
    %252 = arith.select %20, %250, %251 : vector<8x128xi1>, vector<8x128xf32>
    %c4_i32_91 = arith.constant 4 : i32
    %253 = tpu.dynamic_rotate %247 by %c4_i32_91 dim 1 : vector<8x128xf32>, i32 -> vector<8x128xf32>
    %c124_i32_92 = arith.constant 124 : i32
    %254 = tpu.dynamic_rotate %247 by %c124_i32_92 dim 1 : vector<8x128xf32>, i32 -> vector<8x128xf32>
    %255 = arith.select %20, %253, %254 : vector<8x128xi1>, vector<8x128xf32>
    %256 = arith.minimumf %244, %252 : vector<8x128xf32>
    %257 = arith.maximumf %244, %252 : vector<8x128xf32>
    %258 = arith.select %249, %256, %257 : vector<8x128xi1>, vector<8x128xf32>
    %259 = arith.minimumf %247, %255 : vector<8x128xf32>
    %260 = arith.maximumf %247, %255 : vector<8x128xf32>
    %261 = arith.select %249, %259, %260 : vector<8x128xi1>, vector<8x128xf32>
    %262 = arith.xori %219, %16 : vector<8x128xi1>
    %cst_93 = arith.constant dense<true> : vector<8x128xi1>
    %263 = arith.xori %262, %cst_93 : vector<8x128xi1>
    %c2_i32_94 = arith.constant 2 : i32
    %264 = tpu.dynamic_rotate %258 by %c2_i32_94 dim 1 : vector<8x128xf32>, i32 -> vector<8x128xf32>
    %c126_i32_95 = arith.constant 126 : i32
    %265 = tpu.dynamic_rotate %258 by %c126_i32_95 dim 1 : vector<8x128xf32>, i32 -> vector<8x128xf32>
    %266 = arith.select %12, %264, %265 : vector<8x128xi1>, vector<8x128xf32>
    %c2_i32_96 = arith.constant 2 : i32
    %267 = tpu.dynamic_rotate %261 by %c2_i32_96 dim 1 : vector<8x128xf32>, i32 -> vector<8x128xf32>
    %c126_i32_97 = arith.constant 126 : i32
    %268 = tpu.dynamic_rotate %261 by %c126_i32_97 dim 1 : vector<8x128xf32>, i32 -> vector<8x128xf32>
    %269 = arith.select %12, %267, %268 : vector<8x128xi1>, vector<8x128xf32>
    %270 = arith.minimumf %258, %266 : vector<8x128xf32>
    %271 = arith.maximumf %258, %266 : vector<8x128xf32>
    %272 = arith.select %263, %270, %271 : vector<8x128xi1>, vector<8x128xf32>
    %273 = arith.minimumf %261, %269 : vector<8x128xf32>
    %274 = arith.maximumf %261, %269 : vector<8x128xf32>
    %275 = arith.select %263, %273, %274 : vector<8x128xi1>, vector<8x128xf32>
    %276 = arith.xori %219, %8 : vector<8x128xi1>
    %cst_98 = arith.constant dense<true> : vector<8x128xi1>
    %277 = arith.xori %276, %cst_98 : vector<8x128xi1>
    %c1_i32_99 = arith.constant 1 : i32
    %278 = tpu.dynamic_rotate %272 by %c1_i32_99 dim 1 : vector<8x128xf32>, i32 -> vector<8x128xf32>
    %c127_i32_100 = arith.constant 127 : i32
    %279 = tpu.dynamic_rotate %272 by %c127_i32_100 dim 1 : vector<8x128xf32>, i32 -> vector<8x128xf32>
    %280 = arith.select %4, %278, %279 : vector<8x128xi1>, vector<8x128xf32>
    %c1_i32_101 = arith.constant 1 : i32
    %281 = tpu.dynamic_rotate %275 by %c1_i32_101 dim 1 : vector<8x128xf32>, i32 -> vector<8x128xf32>
    %c127_i32_102 = arith.constant 127 : i32
    %282 = tpu.dynamic_rotate %275 by %c127_i32_102 dim 1 : vector<8x128xf32>, i32 -> vector<8x128xf32>
    %283 = arith.select %4, %281, %282 : vector<8x128xi1>, vector<8x128xf32>
    %284 = arith.minimumf %272, %280 : vector<8x128xf32>
    %285 = arith.maximumf %272, %280 : vector<8x128xf32>
    %286 = arith.select %277, %284, %285 : vector<8x128xi1>, vector<8x128xf32>
    %287 = arith.minimumf %275, %283 : vector<8x128xf32>
    %288 = arith.maximumf %275, %283 : vector<8x128xf32>
    %289 = arith.select %277, %287, %288 : vector<8x128xi1>, vector<8x128xf32>
    %c64_i32_103 = arith.constant 64 : i32
    %290 = vector.broadcast %c64_i32_103 : i32 to vector<8x128xi32>
    %291 = arith.andi %0, %290 : vector<8x128xi32>
    %c0_i32_104 = arith.constant 0 : i32
    %292 = vector.broadcast %c0_i32_104 : i32 to vector<8x128xi32>
    %293 = arith.cmpi eq, %291, %292 : vector<8x128xi32>
    %294 = arith.xori %293, %48 : vector<8x128xi1>
    %cst_105 = arith.constant dense<true> : vector<8x128xi1>
    %295 = arith.xori %294, %cst_105 : vector<8x128xi1>
    %c32_i32_106 = arith.constant 32 : i32
    %296 = tpu.dynamic_rotate %286 by %c32_i32_106 dim 1 : vector<8x128xf32>, i32 -> vector<8x128xf32>
    %c96_i32 = arith.constant 96 : i32
    %297 = tpu.dynamic_rotate %286 by %c96_i32 dim 1 : vector<8x128xf32>, i32 -> vector<8x128xf32>
    %298 = arith.select %44, %296, %297 : vector<8x128xi1>, vector<8x128xf32>
    %c32_i32_107 = arith.constant 32 : i32
    %299 = tpu.dynamic_rotate %289 by %c32_i32_107 dim 1 : vector<8x128xf32>, i32 -> vector<8x128xf32>
    %c96_i32_108 = arith.constant 96 : i32
    %300 = tpu.dynamic_rotate %289 by %c96_i32_108 dim 1 : vector<8x128xf32>, i32 -> vector<8x128xf32>
    %301 = arith.select %44, %299, %300 : vector<8x128xi1>, vector<8x128xf32>
    %302 = arith.minimumf %286, %298 : vector<8x128xf32>
    %303 = arith.maximumf %286, %298 : vector<8x128xf32>
    %304 = arith.select %295, %302, %303 : vector<8x128xi1>, vector<8x128xf32>
    %305 = arith.minimumf %289, %301 : vector<8x128xf32>
    %306 = arith.maximumf %289, %301 : vector<8x128xf32>
    %307 = arith.select %295, %305, %306 : vector<8x128xi1>, vector<8x128xf32>
    %308 = arith.xori %293, %40 : vector<8x128xi1>
    %cst_109 = arith.constant dense<true> : vector<8x128xi1>
    %309 = arith.xori %308, %cst_109 : vector<8x128xi1>
    %c16_i32_110 = arith.constant 16 : i32
    %310 = tpu.dynamic_rotate %304 by %c16_i32_110 dim 1 : vector<8x128xf32>, i32 -> vector<8x128xf32>
    %c112_i32_111 = arith.constant 112 : i32
    %311 = tpu.dynamic_rotate %304 by %c112_i32_111 dim 1 : vector<8x128xf32>, i32 -> vector<8x128xf32>
    %312 = arith.select %36, %310, %311 : vector<8x128xi1>, vector<8x128xf32>
    %c16_i32_112 = arith.constant 16 : i32
    %313 = tpu.dynamic_rotate %307 by %c16_i32_112 dim 1 : vector<8x128xf32>, i32 -> vector<8x128xf32>
    %c112_i32_113 = arith.constant 112 : i32
    %314 = tpu.dynamic_rotate %307 by %c112_i32_113 dim 1 : vector<8x128xf32>, i32 -> vector<8x128xf32>
    %315 = arith.select %36, %313, %314 : vector<8x128xi1>, vector<8x128xf32>
    %316 = arith.minimumf %304, %312 : vector<8x128xf32>
    %317 = arith.maximumf %304, %312 : vector<8x128xf32>
    %318 = arith.select %309, %316, %317 : vector<8x128xi1>, vector<8x128xf32>
    %319 = arith.minimumf %307, %315 : vector<8x128xf32>
    %320 = arith.maximumf %307, %315 : vector<8x128xf32>
    %321 = arith.select %309, %319, %320 : vector<8x128xi1>, vector<8x128xf32>
    %322 = arith.xori %293, %32 : vector<8x128xi1>
    %cst_114 = arith.constant dense<true> : vector<8x128xi1>
    %323 = arith.xori %322, %cst_114 : vector<8x128xi1>
    %c8_i32_115 = arith.constant 8 : i32
    %324 = tpu.dynamic_rotate %318 by %c8_i32_115 dim 1 : vector<8x128xf32>, i32 -> vector<8x128xf32>
    %c120_i32_116 = arith.constant 120 : i32
    %325 = tpu.dynamic_rotate %318 by %c120_i32_116 dim 1 : vector<8x128xf32>, i32 -> vector<8x128xf32>
    %326 = arith.select %28, %324, %325 : vector<8x128xi1>, vector<8x128xf32>
    %c8_i32_117 = arith.constant 8 : i32
    %327 = tpu.dynamic_rotate %321 by %c8_i32_117 dim 1 : vector<8x128xf32>, i32 -> vector<8x128xf32>
    %c120_i32_118 = arith.constant 120 : i32
    %328 = tpu.dynamic_rotate %321 by %c120_i32_118 dim 1 : vector<8x128xf32>, i32 -> vector<8x128xf32>
    %329 = arith.select %28, %327, %328 : vector<8x128xi1>, vector<8x128xf32>
    %330 = arith.minimumf %318, %326 : vector<8x128xf32>
    %331 = arith.maximumf %318, %326 : vector<8x128xf32>
    %332 = arith.select %323, %330, %331 : vector<8x128xi1>, vector<8x128xf32>
    %333 = arith.minimumf %321, %329 : vector<8x128xf32>
    %334 = arith.maximumf %321, %329 : vector<8x128xf32>
    %335 = arith.select %323, %333, %334 : vector<8x128xi1>, vector<8x128xf32>
    %336 = arith.xori %293, %24 : vector<8x128xi1>
    %cst_119 = arith.constant dense<true> : vector<8x128xi1>
    %337 = arith.xori %336, %cst_119 : vector<8x128xi1>
    %c4_i32_120 = arith.constant 4 : i32
    %338 = tpu.dynamic_rotate %332 by %c4_i32_120 dim 1 : vector<8x128xf32>, i32 -> vector<8x128xf32>
    %c124_i32_121 = arith.constant 124 : i32
    %339 = tpu.dynamic_rotate %332 by %c124_i32_121 dim 1 : vector<8x128xf32>, i32 -> vector<8x128xf32>
    %340 = arith.select %20, %338, %339 : vector<8x128xi1>, vector<8x128xf32>
    %c4_i32_122 = arith.constant 4 : i32
    %341 = tpu.dynamic_rotate %335 by %c4_i32_122 dim 1 : vector<8x128xf32>, i32 -> vector<8x128xf32>
    %c124_i32_123 = arith.constant 124 : i32
    %342 = tpu.dynamic_rotate %335 by %c124_i32_123 dim 1 : vector<8x128xf32>, i32 -> vector<8x128xf32>
    %343 = arith.select %20, %341, %342 : vector<8x128xi1>, vector<8x128xf32>
    %344 = arith.minimumf %332, %340 : vector<8x128xf32>
    %345 = arith.maximumf %332, %340 : vector<8x128xf32>
    %346 = arith.select %337, %344, %345 : vector<8x128xi1>, vector<8x128xf32>
    %347 = arith.minimumf %335, %343 : vector<8x128xf32>
    %348 = arith.maximumf %335, %343 : vector<8x128xf32>
    %349 = arith.select %337, %347, %348 : vector<8x128xi1>, vector<8x128xf32>
    %350 = arith.xori %293, %16 : vector<8x128xi1>
    %cst_124 = arith.constant dense<true> : vector<8x128xi1>
    %351 = arith.xori %350, %cst_124 : vector<8x128xi1>
    %c2_i32_125 = arith.constant 2 : i32
    %352 = tpu.dynamic_rotate %346 by %c2_i32_125 dim 1 : vector<8x128xf32>, i32 -> vector<8x128xf32>
    %c126_i32_126 = arith.constant 126 : i32
    %353 = tpu.dynamic_rotate %346 by %c126_i32_126 dim 1 : vector<8x128xf32>, i32 -> vector<8x128xf32>
    %354 = arith.select %12, %352, %353 : vector<8x128xi1>, vector<8x128xf32>
    %c2_i32_127 = arith.constant 2 : i32
    %355 = tpu.dynamic_rotate %349 by %c2_i32_127 dim 1 : vector<8x128xf32>, i32 -> vector<8x128xf32>
    %c126_i32_128 = arith.constant 126 : i32
    %356 = tpu.dynamic_rotate %349 by %c126_i32_128 dim 1 : vector<8x128xf32>, i32 -> vector<8x128xf32>
    %357 = arith.select %12, %355, %356 : vector<8x128xi1>, vector<8x128xf32>
    %358 = arith.minimumf %346, %354 : vector<8x128xf32>
    %359 = arith.maximumf %346, %354 : vector<8x128xf32>
    %360 = arith.select %351, %358, %359 : vector<8x128xi1>, vector<8x128xf32>
    %361 = arith.minimumf %349, %357 : vector<8x128xf32>
    %362 = arith.maximumf %349, %357 : vector<8x128xf32>
    %363 = arith.select %351, %361, %362 : vector<8x128xi1>, vector<8x128xf32>
    %364 = arith.xori %293, %8 : vector<8x128xi1>
    %cst_129 = arith.constant dense<true> : vector<8x128xi1>
    %365 = arith.xori %364, %cst_129 : vector<8x128xi1>
    %c1_i32_130 = arith.constant 1 : i32
    %366 = tpu.dynamic_rotate %360 by %c1_i32_130 dim 1 : vector<8x128xf32>, i32 -> vector<8x128xf32>
    %c127_i32_131 = arith.constant 127 : i32
    %367 = tpu.dynamic_rotate %360 by %c127_i32_131 dim 1 : vector<8x128xf32>, i32 -> vector<8x128xf32>
    %368 = arith.select %4, %366, %367 : vector<8x128xi1>, vector<8x128xf32>
    %c1_i32_132 = arith.constant 1 : i32
    %369 = tpu.dynamic_rotate %363 by %c1_i32_132 dim 1 : vector<8x128xf32>, i32 -> vector<8x128xf32>
    %c127_i32_133 = arith.constant 127 : i32
    %370 = tpu.dynamic_rotate %363 by %c127_i32_133 dim 1 : vector<8x128xf32>, i32 -> vector<8x128xf32>
    %371 = arith.select %4, %369, %370 : vector<8x128xi1>, vector<8x128xf32>
    %372 = arith.minimumf %360, %368 : vector<8x128xf32>
    %373 = arith.maximumf %360, %368 : vector<8x128xf32>
    %374 = arith.select %365, %372, %373 : vector<8x128xi1>, vector<8x128xf32>
    %375 = arith.minimumf %363, %371 : vector<8x128xf32>
    %376 = arith.maximumf %363, %371 : vector<8x128xf32>
    %377 = arith.select %365, %375, %376 : vector<8x128xi1>, vector<8x128xf32>
    %c64_i32_134 = arith.constant 64 : i32
    %378 = tpu.dynamic_rotate %374 by %c64_i32_134 dim 1 : vector<8x128xf32>, i32 -> vector<8x128xf32>
    %c64_i32_135 = arith.constant 64 : i32
    %379 = tpu.dynamic_rotate %374 by %c64_i32_135 dim 1 : vector<8x128xf32>, i32 -> vector<8x128xf32>
    %380 = arith.select %52, %378, %379 : vector<8x128xi1>, vector<8x128xf32>
    %c64_i32_136 = arith.constant 64 : i32
    %381 = tpu.dynamic_rotate %377 by %c64_i32_136 dim 1 : vector<8x128xf32>, i32 -> vector<8x128xf32>
    %c64_i32_137 = arith.constant 64 : i32
    %382 = tpu.dynamic_rotate %377 by %c64_i32_137 dim 1 : vector<8x128xf32>, i32 -> vector<8x128xf32>
    %383 = arith.select %52, %381, %382 : vector<8x128xi1>, vector<8x128xf32>
    %384 = arith.minimumf %374, %380 : vector<8x128xf32>
    %385 = arith.maximumf %374, %380 : vector<8x128xf32>
    %386 = arith.select %56, %384, %385 : vector<8x128xi1>, vector<8x128xf32>
    %387 = arith.minimumf %377, %383 : vector<8x128xf32>
    %388 = arith.maximumf %377, %383 : vector<8x128xf32>
    %389 = arith.select %56, %387, %388 : vector<8x128xi1>, vector<8x128xf32>
    %c32_i32_138 = arith.constant 32 : i32
    %390 = tpu.dynamic_rotate %386 by %c32_i32_138 dim 1 : vector<8x128xf32>, i32 -> vector<8x128xf32>
    %c96_i32_139 = arith.constant 96 : i32
    %391 = tpu.dynamic_rotate %386 by %c96_i32_139 dim 1 : vector<8x128xf32>, i32 -> vector<8x128xf32>
    %392 = arith.select %44, %390, %391 : vector<8x128xi1>, vector<8x128xf32>
    %c32_i32_140 = arith.constant 32 : i32
    %393 = tpu.dynamic_rotate %389 by %c32_i32_140 dim 1 : vector<8x128xf32>, i32 -> vector<8x128xf32>
    %c96_i32_141 = arith.constant 96 : i32
    %394 = tpu.dynamic_rotate %389 by %c96_i32_141 dim 1 : vector<8x128xf32>, i32 -> vector<8x128xf32>
    %395 = arith.select %44, %393, %394 : vector<8x128xi1>, vector<8x128xf32>
    %396 = arith.minimumf %386, %392 : vector<8x128xf32>
    %397 = arith.maximumf %386, %392 : vector<8x128xf32>
    %398 = arith.select %48, %396, %397 : vector<8x128xi1>, vector<8x128xf32>
    %399 = arith.minimumf %389, %395 : vector<8x128xf32>
    %400 = arith.maximumf %389, %395 : vector<8x128xf32>
    %401 = arith.select %48, %399, %400 : vector<8x128xi1>, vector<8x128xf32>
    %c16_i32_142 = arith.constant 16 : i32
    %402 = tpu.dynamic_rotate %398 by %c16_i32_142 dim 1 : vector<8x128xf32>, i32 -> vector<8x128xf32>
    %c112_i32_143 = arith.constant 112 : i32
    %403 = tpu.dynamic_rotate %398 by %c112_i32_143 dim 1 : vector<8x128xf32>, i32 -> vector<8x128xf32>
    %404 = arith.select %36, %402, %403 : vector<8x128xi1>, vector<8x128xf32>
    %c16_i32_144 = arith.constant 16 : i32
    %405 = tpu.dynamic_rotate %401 by %c16_i32_144 dim 1 : vector<8x128xf32>, i32 -> vector<8x128xf32>
    %c112_i32_145 = arith.constant 112 : i32
    %406 = tpu.dynamic_rotate %401 by %c112_i32_145 dim 1 : vector<8x128xf32>, i32 -> vector<8x128xf32>
    %407 = arith.select %36, %405, %406 : vector<8x128xi1>, vector<8x128xf32>
    %408 = arith.minimumf %398, %404 : vector<8x128xf32>
    %409 = arith.maximumf %398, %404 : vector<8x128xf32>
    %410 = arith.select %40, %408, %409 : vector<8x128xi1>, vector<8x128xf32>
    %411 = arith.minimumf %401, %407 : vector<8x128xf32>
    %412 = arith.maximumf %401, %407 : vector<8x128xf32>
    %413 = arith.select %40, %411, %412 : vector<8x128xi1>, vector<8x128xf32>
    %c8_i32_146 = arith.constant 8 : i32
    %414 = tpu.dynamic_rotate %410 by %c8_i32_146 dim 1 : vector<8x128xf32>, i32 -> vector<8x128xf32>
    %c120_i32_147 = arith.constant 120 : i32
    %415 = tpu.dynamic_rotate %410 by %c120_i32_147 dim 1 : vector<8x128xf32>, i32 -> vector<8x128xf32>
    %416 = arith.select %28, %414, %415 : vector<8x128xi1>, vector<8x128xf32>
    %c8_i32_148 = arith.constant 8 : i32
    %417 = tpu.dynamic_rotate %413 by %c8_i32_148 dim 1 : vector<8x128xf32>, i32 -> vector<8x128xf32>
    %c120_i32_149 = arith.constant 120 : i32
    %418 = tpu.dynamic_rotate %413 by %c120_i32_149 dim 1 : vector<8x128xf32>, i32 -> vector<8x128xf32>
    %419 = arith.select %28, %417, %418 : vector<8x128xi1>, vector<8x128xf32>
    %420 = arith.minimumf %410, %416 : vector<8x128xf32>
    %421 = arith.maximumf %410, %416 : vector<8x128xf32>
    %422 = arith.select %32, %420, %421 : vector<8x128xi1>, vector<8x128xf32>
    %423 = arith.minimumf %413, %419 : vector<8x128xf32>
    %424 = arith.maximumf %413, %419 : vector<8x128xf32>
    %425 = arith.select %32, %423, %424 : vector<8x128xi1>, vector<8x128xf32>
    %c4_i32_150 = arith.constant 4 : i32
    %426 = tpu.dynamic_rotate %422 by %c4_i32_150 dim 1 : vector<8x128xf32>, i32 -> vector<8x128xf32>
    %c124_i32_151 = arith.constant 124 : i32
    %427 = tpu.dynamic_rotate %422 by %c124_i32_151 dim 1 : vector<8x128xf32>, i32 -> vector<8x128xf32>
    %428 = arith.select %20, %426, %427 : vector<8x128xi1>, vector<8x128xf32>
    %c4_i32_152 = arith.constant 4 : i32
    %429 = tpu.dynamic_rotate %425 by %c4_i32_152 dim 1 : vector<8x128xf32>, i32 -> vector<8x128xf32>
    %c124_i32_153 = arith.constant 124 : i32
    %430 = tpu.dynamic_rotate %425 by %c124_i32_153 dim 1 : vector<8x128xf32>, i32 -> vector<8x128xf32>
    %431 = arith.select %20, %429, %430 : vector<8x128xi1>, vector<8x128xf32>
    %432 = arith.minimumf %422, %428 : vector<8x128xf32>
    %433 = arith.maximumf %422, %428 : vector<8x128xf32>
    %434 = arith.select %24, %432, %433 : vector<8x128xi1>, vector<8x128xf32>
    %435 = arith.minimumf %425, %431 : vector<8x128xf32>
    %436 = arith.maximumf %425, %431 : vector<8x128xf32>
    %437 = arith.select %24, %435, %436 : vector<8x128xi1>, vector<8x128xf32>
    %c2_i32_154 = arith.constant 2 : i32
    %438 = tpu.dynamic_rotate %434 by %c2_i32_154 dim 1 : vector<8x128xf32>, i32 -> vector<8x128xf32>
    %c126_i32_155 = arith.constant 126 : i32
    %439 = tpu.dynamic_rotate %434 by %c126_i32_155 dim 1 : vector<8x128xf32>, i32 -> vector<8x128xf32>
    %440 = arith.select %12, %438, %439 : vector<8x128xi1>, vector<8x128xf32>
    %c2_i32_156 = arith.constant 2 : i32
    %441 = tpu.dynamic_rotate %437 by %c2_i32_156 dim 1 : vector<8x128xf32>, i32 -> vector<8x128xf32>
    %c126_i32_157 = arith.constant 126 : i32
    %442 = tpu.dynamic_rotate %437 by %c126_i32_157 dim 1 : vector<8x128xf32>, i32 -> vector<8x128xf32>
    %443 = arith.select %12, %441, %442 : vector<8x128xi1>, vector<8x128xf32>
    %444 = arith.minimumf %434, %440 : vector<8x128xf32>
    %445 = arith.maximumf %434, %440 : vector<8x128xf32>
    %446 = arith.select %16, %444, %445 : vector<8x128xi1>, vector<8x128xf32>
    %447 = arith.minimumf %437, %443 : vector<8x128xf32>
    %448 = arith.maximumf %437, %443 : vector<8x128xf32>
    %449 = arith.select %16, %447, %448 : vector<8x128xi1>, vector<8x128xf32>
    %c1_i32_158 = arith.constant 1 : i32
    %450 = tpu.dynamic_rotate %446 by %c1_i32_158 dim 1 : vector<8x128xf32>, i32 -> vector<8x128xf32>
    %c127_i32_159 = arith.constant 127 : i32
    %451 = tpu.dynamic_rotate %446 by %c127_i32_159 dim 1 : vector<8x128xf32>, i32 -> vector<8x128xf32>
    %452 = arith.select %4, %450, %451 : vector<8x128xi1>, vector<8x128xf32>
    %c1_i32_160 = arith.constant 1 : i32
    %453 = tpu.dynamic_rotate %449 by %c1_i32_160 dim 1 : vector<8x128xf32>, i32 -> vector<8x128xf32>
    %c127_i32_161 = arith.constant 127 : i32
    %454 = tpu.dynamic_rotate %449 by %c127_i32_161 dim 1 : vector<8x128xf32>, i32 -> vector<8x128xf32>
    %455 = arith.select %4, %453, %454 : vector<8x128xi1>, vector<8x128xf32>
    %456 = arith.minimumf %446, %452 : vector<8x128xf32>
    %457 = arith.maximumf %446, %452 : vector<8x128xf32>
    %458 = arith.select %8, %456, %457 : vector<8x128xi1>, vector<8x128xf32>
    %459 = arith.minimumf %449, %455 : vector<8x128xf32>
    %460 = arith.maximumf %449, %455 : vector<8x128xf32>
    %461 = arith.select %8, %459, %460 : vector<8x128xi1>, vector<8x128xf32>
    %462 = arith.subf %458, %461 : vector<8x128xf32>
    %463 = math.absf %462 : vector<8x128xf32>
    %464 = arith.addf %57, %463 : vector<8x128xf32>
    %c0_162 = arith.constant 0 : index
    %c0_163 = arith.constant 0 : index
    %465 = vector.load %arg3[%c0_162, %c0_163] : memref<8x128xf32, #tpu.memory_space<vmem>>, vector<8x128xf32>
    tpu.vector_store %arg3[%c0_162, %c0_163], %464 {strides = array<i32>} : memref<8x128xf32, #tpu.memory_space<vmem>>, vector<8x128xf32>,
    return
  }
  func.func @transform_0(%arg0: i32) -> (i32, i32) {
    %c0_i32 = arith.constant 0 : i32
    %c0_i32_0 = arith.constant 0 : i32
    return %arg0, %c0_i32 : i32, i32
  }
  func.func @transform_1(%arg0: i32) -> (i32, i32) {
    %c0_i32 = arith.constant 0 : i32
    %c0_i32_0 = arith.constant 0 : i32
    return %arg0, %c0_i32 : i32, i32
  }
  func.func @transform_2(%arg0: i32) -> (i32, i32) {
    %c0_i32 = arith.constant 0 : i32
    %c0_i32_0 = arith.constant 0 : i32
    return %arg0, %c0_i32 : i32, i32
  }
}

</mosaic_0001>

<bundles_post_ra>
// kernel: tpu_custom_call.1
= control target key start
LH: loop header
LB: loop body
LE: loop exit
PB: predicated region body
PF: predicated region fallthrough
CT: control target
= control target key end

     0   :  { %7 = vsyncpa [#allocation3], 0  ;;  %s1719_s0 = inlined_call_operand.hbm [shape: f32[16,128], index: 0, kind: input, shape index: {}]   ;;  %s1720_s1 = inlined_call_operand.hbm [shape: f32[16,128], index: 1, kind: input, shape index: {}]   ;;  %s1721_s2 = inlined_call_operand.hbm [shape: f32[16,128], index: 2, kind: output, shape index: {}]  }
   0x1   :  { %9 = vsyncpa [#allocation3 + $0x1], 0 }
   0x2   :  { %10 = vsyncpa [#allocation6], 0 }
   0x3   :  { %12 = vsyncpa [#allocation6 + $0x1], 0 }
   0x4   :  { %13 = vsyncpa [#allocation4], 0 }
   0x5   :  { %15 = vsyncpa [#allocation4 + $0x1], 0  ;;  %s1077_s9 = smov 0   ;;  %s1079_s10 = smov 0  }
   0x6   :  { %s1081_s11 = smov 0   ;;  %s1083_s12 = smov 0  }
   0x7 LB: > { %s1098_s13 = sadd.s32 4294967295, %s1043_s12   ;;  %s833_s14 = sadd.s32 4294967294, %s1043_s12   ;;  %s1043_s12 = sphi %s1083_s12, %s1769_s12   ;;  %s1039_s11 = sphi %s1081_s11, %s1768_s11   ;;  %s1035_s10 = sphi %s1079_s10, %s1767_s10   ;;  %s1031_s9 = sphi %s1077_s9, %s1766_s9  }
   0x8   : > { %s1102_s15 = sadd.s32 1, %s1043_s12   ;;  %s28_s16 = sadd.s32 1, %s1039_s11 }
   0x9   : > { %s25_s17 = ssub.s32 %s1043_s12, %s1102_s15  ;;  %p35_p0 = scmp.ne.s32.totalorder %s1039_s11, %s1035_s10 }
   0xa   : > { %p26_p1 = scmp.eq.s32.totalorder %s25_s17, 0  ;;  %p36_p2 = scmp.eq.s32.totalorder %s1043_s12, 0 }
   0xb   : > { %p41_p3 = scmp.ne.s32.totalorder %s1035_s10, %s1031_s9  ;;  %p42_p4 = scmp.eq.s32.totalorder %s1098_s13, 0 }
   0xc   : > { %s1114_s18 = scalar_select %p26_p1, %s1039_s11, %s28_s16  }
   0xd   : > { %p1116_p5 = por %p36_p2, %p35_p0  ;;  %p1120_p6 = por %p42_p4, %p41_p3 }
   0xe   : > { %p91_p7 = scmp.eq.s32.totalorder %s1098_s13, 1  ;;  %p97_p8 = scmp.eq.s32.totalorder %s833_s14, 1 }
   0xf   : > { %s1727_s20 = scalar_select %p1120_p6, 1, 0 }
  0x10   : > { %p865_p10 = scmp.lt.s32.totalorder %s1043_s12, 2  ;;  %p1127_p11 = por %p91_p7, %p35_p0 }
  0x11   : > { %p1131_p12 = por %p97_p8, %p41_p3  ;;  %s1136_s23 = sand.u32 1, %s1039_s11  }
  0x12   : > { %s1728_s21 = scalar_select %p1127_p11, 1, 0 }
  0x13   : > { %s1729_s22 = scalar_select %p1131_p12, 1, 0 }
  0x14   : > { %s837_s24 = sshll.u32 %s1043_s12, 7  ;;  %s836_s25 = sshll.u32 %s1136_s23, 3 }
  0x15   : > { %s1145_s28 = scalar_lea.hbm %s1719_s0, %s837_s24  ;;  %s121_s29 = scalar_lea.vmem [#allocation2], %s836_s25 }
  0x16   : > { %s128_s30 = sshll.u32 %s121_s29, 4  ;;  %p1151_p13 = pnand %p865_p10, %p1116_p5  ;;  %s1155_s30 = int_to_ptr.vmem [resolvable:$true] %s128_s30 }
  0x17   : > { %s118_s4 = scalar_lea.sflag [#allocation3], %s1136_s23  ;;  %s913_s5 = scalar_lea.hbm %s1145_s28, 128 }
  0x18   : > { %p914_p2 = scmp.ne.s32.totalorder %s1145_s28, %s913_s5  ;;  %p915_p3 = pneg %p1151_p13 }
  0x19   : > { %s918_s8 = scalar_lea.hbm %s1719_s0, 256  ;;  %p919_p5 = scmp.lt.u32.totalorder %s1145_s28, %s1719_s0 }
  0x1a   : > { %p916_p4 = pnand %p915_p3, %p914_p2  ;;  %p920_p8 = scmp.lt.u32.totalorder %s918_s8, %s913_s5 }
  0x1b   : > { %p922_p9 = scmp.lt.u32.totalorder %s913_s5, %s1145_s28 }
  0x1c   : > { %p917_p7 = pneg %p916_p4  ;;  %p921_p10 = por %p920_p8, %p919_p5 }
  0x1e   : > { %p923_p0 = por %p922_p9, %p921_p10 }
  0x20   : > { %p924_p1 = pnand %p923_p0, %p917_p7 }
  0x22   : > { %927 = shalt.err (!%p924_p1)
}
  0x23   : > { %s928_s17 = scalar_lea.vmem %s1155_s30, 128  ;;  %s1045_s19 = smov [#allocation2]  }
  0x24   : > { %p929_p2 = scmp.ne.s32.totalorder %s1155_s30, %s928_s17  ;;  %s933_s26 = sshll.u32 %s1045_s19, 4  ;;  %s934_s26 = int_to_ptr.vmem [resolvable:$false] %s933_s26 }
  0x25   : > { %s935_s27 = scalar_lea.vmem %s934_s26, 256  ;;  %p936_p11 = scmp.lt.s32.totalorder %s1155_s30, %s934_s26 }
  0x26   : > { %p931_p4 = pnand %p929_p2, %p915_p3  ;;  %p937_p5 = scmp.lt.s32.totalorder %s935_s27, %s928_s17 }
  0x28   : > { %p932_p12 = pneg %p931_p4  ;;  %p938_p8 = por %p937_p5, %p936_p11 }
  0x2a   : > { %p939_p9 = pnand %p938_p8, %p932_p12 }
  0x2c   : > { %942 = shalt.err (!%p939_p9)
}
  0x2d   : > { %857 = dma.hbm_to_vmem [thread:$0]  (!%p1151_p13), %s1145_s28, 128, %s1155_s30, %s118_s4  }
  0x2e   : > { %p1731_p0 = scmp.lt.s32.totalorder %s1043_s12, 3  ;;  %p1732_p1 = scmp.ge.s32.totalorder %s1043_s12, 1 }
  0x2f   : > { %s1198_s7 = scalar_lea.hbm %s1720_s1, %s837_s24  ;;  %s139_s8 = scalar_lea.vmem [#allocation5], %s836_s25 }
  0x30   : > { %p1189_p7 = pnand %p1732_p1, %p1731_p0  ;;  %s146_s14 = sshll.u32 %s139_s8, 4  ;;  %s147_s14 = int_to_ptr.vmem [resolvable:$true] %s146_s14 }
  0x31   : > { %s136_s28 = scalar_lea.sflag [#allocation6], %s1136_s23  ;;  %s943_s30 = scalar_lea.hbm %s1198_s7, 128 }
  0x32   : > { %s1733_s29 = scalar_select %p1189_p7, 1, 0 }
  0x33   : > { %p944_p11 = scmp.ne.s32.totalorder %s1198_s7, %s943_s30  ;;  %s948_s24 = scalar_lea.hbm %s1720_s1, 256 }
  0x34   : > { %p949_p2 = scmp.lt.u32.totalorder %s1198_s7, %s1720_s1  ;;  %p950_p4 = scmp.lt.u32.totalorder %s948_s24, %s943_s30 }
  0x35   : > { %p946_p12 = pnand %p944_p11, %p915_p3  ;;  %p952_p8 = scmp.lt.u32.totalorder %s943_s30, %s1198_s7 }
  0x36   : > { %p951_p5 = por %p950_p4, %p949_p2 }
  0x37   : > { %p947_p10 = pneg %p946_p12 }
  0x38   : > { %p953_p9 = por %p952_p8, %p951_p5 }
  0x3a   : > { %p954_p0 = pnand %p953_p9, %p947_p10 }
  0x3c   : > { %957 = shalt.err (!%p954_p0)
}
  0x3d   : > { %s958_s23 = scalar_lea.vmem %s147_s14, 128  ;;  %s1046_s25 = smov [#allocation5]  }
  0x3e   : > { %p959_p1 = scmp.ne.s32.totalorder %s147_s14, %s958_s23  ;;  %s963_s26 = sshll.u32 %s1046_s25, 4  ;;  %s964_s26 = int_to_ptr.vmem [resolvable:$false] %s963_s26 }
  0x3f   : > { %s965_s27 = scalar_lea.vmem %s964_s26, 256  ;;  %p966_p6 = scmp.lt.s32.totalorder %s147_s14, %s964_s26 }
  0x40   : > { %p961_p11 = pnand %p959_p1, %p915_p3  ;;  %p967_p7 = scmp.lt.s32.totalorder %s965_s27, %s958_s23 }
  0x42   : > { %p962_p12 = pneg %p961_p11  ;;  %p968_p2 = por %p967_p7, %p966_p6 }
  0x44   : > { %p969_p4 = pnand %p968_p2, %p962_p12 }
  0x46   : > { %972 = shalt.err (!%p969_p4)
}
  0x47   : > { %860 = dma.hbm_to_vmem [thread:$0]  (!%p1151_p13), %s1198_s7, 128, %s147_s14, %s136_s28  }
  0x48   : > { %p1734_p10 = scmp.ne.s32.totalorder %s1733_s29, 0 }
  0x49   : > { %s1225_s5 = sand.u32 (!%p1734_p10), 1, %s1035_s10   ;;  %p1735_p6 = scmp.ne.s32.totalorder (!%p1734_p10), %s1727_s20, 0 }
  0x4a   : > { %155 = sbr.rel (%p1734_p10) target bundleno = 3445 (0xd75), region = 28  ;;  %s1228_s6 = sshll.u32 (!%p1734_p10), %s1225_s5, 3 }
  0x4b   : > { %s158_s8 = scalar_lea.sflag (!%p1734_p10), [#allocation3], %s1225_s5  ;;  %s161_s30 = scalar_lea.vmem (!%p1734_p10), [#allocation2], %s1228_s6 }
  0x51   : > { %1018 = dma.done.wait (%p1735_p6), %s158_s8, 128  }
  0x52   : > { %1020 = vsyncadd (%p1735_p6), %s158_s8, 4294967168  ;;  %s167_s3 = scalar_lea.sflag [#allocation6], %s1225_s5  ;;  %s170_s29 = scalar_lea.vmem [#allocation5], %s1228_s6 }
  0x53   : > { %1022 = dma.done.wait (%p1735_p6), %s167_s3, 128  }
  0x54   : > { %1024 = vsyncadd (%p1735_p6), %s167_s3, 4294967168  ;;  %v196_v0 = vlaneseq  ;;  %s1047_s7 = smov 1   ;;  %v236_v2 = vld [vmem:[%s161_s30] sm:$0xff]  ;;  %s1048_s14 = smov 127   ;;  %v237_v3 = vld [vmem:[%s170_s29] sm:$0xff]  ;;  %vm1050_vm4 = vmmov 1  }
  0x55   : > { %242 = vrot.lane.b32.xlu1 %v236_v2, %s1048_s14  ;;  %s1049_s20 = smov 2   ;;  %s1051_s28 = smov 126  }
  0x56   : > { %v1242_v1 = vand.u32 127, %v196_v0  ;;  %s1052_s4 = smov 4   ;;  %s1053_s16 = smov 124  }
  0x57   : > { %s1054_s24 = smov 8   ;;  %s1055_s17 = smov 120  }
  0x58   : > { %198 = vrot.lane.b32.xlu0 %v1242_v1, %s1047_s7  ;;  %v202_v4 = vand.u32 1, %v1242_v1  ;;  %v208_v5 = vand.u32 2, %v1242_v1  ;;  %v200_v9 = vxor.u32 1, %v1242_v1  ;;  %v214_v23 = vand.u32 4, %v1242_v1  ;;  %s1056_s19 = smov 16   ;;  %s1057_s23 = smov 112  }
  0x59   : > { %245 = vrot.lane.b32.xlu1 %v237_v3, %s1047_s7  ;;  %v206_v26 = vxor.u32 2, %v1242_v1  ;;  %v220_v52 = vand.u32 8, %v1242_v1  ;;  %v212_v55 = vxor.u32 4, %v1242_v1  ;;  %s1058_s25 = smov 32   ;;  %s1059_s26 = smov 96  }
  0x5a   : > { %vm1254_vm0 = vcmp.eq.s32.totalorder %v202_v4, 0  ;;  %vm1258_vm1 = vcmp.eq.s32.totalorder %v208_v5, 0  ;;  %vm1281_vm6 = vcmp.eq.s32.totalorder %v214_v23, 0  ;;  %s1060_s27 = smov 64   ;;  %s845_s8 = sshll.u32 %s1098_s13, 7 }
  0x5b   : > { %vm238_vm2 = vmxor %vm1258_vm1, %vm1254_vm0  ;;  %vm1319_vm12 = vcmp.eq.s32.totalorder %v220_v52, 0  ;;  %s195_s30 = scalar_lea.vmem [#allocation7], %s1228_s6  ;;  %p1763_p3 = scmp.ne.s32.totalorder %s1728_s21, 0 }
  0x5c   : > { %240 = vrot.lane.b32.xlu0 %v236_v2, %s1047_s7  ;;  %vm239_vm5 = vmxor %vm238_vm2, %vm1050_vm4  ;;  %s740_s3 = sshll.u32 %s195_s30, 4  ;;  %s1061_s13 = smov [#allocation7]   ;;  %s1677_s3 = int_to_ptr.vmem [resolvable:$true] %s740_s3 }
  0x5d   : > { %204 = vrot.lane.b32.xlu1 %v1242_v1, %s1049_s20  ;;  %vm256_vm7 = vmxor %vm1281_vm6, %vm1258_vm1  ;;  %s977_s6 = sshll.u32 %s1061_s13, 4  ;;  %s978_s6 = int_to_ptr.vmem [resolvable:$false] %s977_s6 }
  0x5e   : > { %vm257_vm9 = vmxor %vm256_vm7, %vm1050_vm4  ;;  %p980_p8 = scmp.lt.s32.totalorder %s1677_s3, %s978_s6 }
  0x5f   : > { %vm274_vm10 = vmxor %vm1281_vm6, %vm1254_vm0 }
  0x60   : > { %247 = vrot.lane.b32.xlu0 %v237_v3, %s1048_s14  ;;  %vm275_vm11 = vmxor %vm274_vm10, %vm1050_vm4 }
  0x61   : > { %vm292_vm13 = vmxor %vm1319_vm12, %vm1281_vm6 }
  0x62   : > { %vm293_vm15 = vmxor %vm292_vm13, %vm1050_vm4 }
  0x63   : > { %vm310_vm2 = vmxor %vm1319_vm12, %vm1258_vm1 }
  0x64   : > { %vm328_vm7 = vmxor %vm1319_vm12, %vm1254_vm0 }
  0xc7   : > { %v243_v11 = vpop.permute.xlu1 %242 }
  0xca   : > { %v199_v8 = vpop.permute.xlu0 %198 }
  0xcb   : > { %vm1267_vm3 = vcmp.eq.s32.totalorder %v199_v8, %v200_v9  ;;  %v246_v16 = vpop.permute.xlu1 %245 }
  0xce   : > { %v241_v12 = vpop.permute.xlu0 %240 }
  0xcf   : > { %v244_v13 = vsel %vm1267_vm3, %v241_v12, %v243_v11  ;;  %v205_v24 = vpop.permute.xlu1 %204 }
  0xd0   : > { %v250_v14 = vmin.f32 %v236_v2, %v244_v13  ;;  %v251_v15 = vmax.f32 %v236_v2, %v244_v13  ;;  %vm1290_vm8 = vcmp.eq.s32.totalorder %v205_v24, %v206_v26 }
  0xd2   : > { %v248_v17 = vpop.permute.xlu0 %247  ;;  %v252_v18 = vsel %vm239_vm5, %v250_v14, %v251_v15 }
  0xd3   : > { %v249_v19 = vsel %vm1267_vm3, %v246_v16, %v248_v17  ;;  %260 = vrot.lane.b32.xlu1 %v252_v18, %s1051_s28  ;;  %258 = vrot.lane.b32.xlu0 %v252_v18, %s1049_s20 }
  0xd4   : > { %v253_v20 = vmin.f32 %v237_v3, %v249_v19  ;;  %v254_v21 = vmax.f32 %v237_v3, %v249_v19 }
  0xd6   : > { %v255_v22 = vsel %vm239_vm5, %v253_v20, %v254_v21  ;;  %vm311_vm5 = vmxor %vm310_vm2, %vm1050_vm4 }
  0xd7   : > { %265 = vrot.lane.b32.xlu1 %v255_v22, %s1051_s28  ;;  %263 = vrot.lane.b32.xlu0 %v255_v22, %s1049_s20 }
 0x145   : > { %v261_v28 = vpop.permute.xlu1 %260  ;;  %v259_v29 = vpop.permute.xlu0 %258 }
 0x146   : > { %v262_v30 = vsel %vm1290_vm8, %v259_v29, %v261_v28 }
 0x147   : > { %v268_v31 = vmin.f32 %v252_v18, %v262_v30  ;;  %v269_v32 = vmax.f32 %v252_v18, %v262_v30 }
 0x149   : > { %v266_v33 = vpop.permute.xlu1 %265  ;;  %v264_v34 = vpop.permute.xlu0 %263  ;;  %v270_v35 = vsel %vm257_vm9, %v268_v31, %v269_v32 }
 0x14a   : > { %v267_v36 = vsel %vm1290_vm8, %v264_v34, %v266_v33  ;;  %278 = vrot.lane.b32.xlu1 %v270_v35, %s1048_s14  ;;  %276 = vrot.lane.b32.xlu0 %v270_v35, %s1047_s7 }
 0x14b   : > { %v271_v37 = vmin.f32 %v255_v22, %v267_v36  ;;  %v272_v38 = vmax.f32 %v255_v22, %v267_v36 }
 0x14d   : > { %v273_v39 = vsel %vm257_vm9, %v271_v37, %v272_v38  ;;  %vm329_vm9 = vmxor %vm328_vm7, %vm1050_vm4  ;;  %v218_v38 = vxor.u32 8, %v1242_v1 }
 0x14e   : > { %283 = vrot.lane.b32.xlu1 %v273_v39, %s1048_s14  ;;  %281 = vrot.lane.b32.xlu0 %v273_v39, %s1047_s7 }
 0x152   : > { %210 = vrot.lane.b32.xlu0 %v1242_v1, %s1052_s4 }
 0x1bc   : > { %v279_v40 = vpop.permute.xlu1 %278  ;;  %v277_v41 = vpop.permute.xlu0 %276 }
 0x1bd   : > { %v280_v42 = vsel %vm1267_vm3, %v277_v41, %v279_v40 }
 0x1be   : > { %v286_v43 = vmin.f32 %v270_v35, %v280_v42  ;;  %v287_v44 = vmax.f32 %v270_v35, %v280_v42  ;;  %v226_v35 = vand.u32 16, %v1242_v1 }
 0x1c0   : > { %v284_v45 = vpop.permute.xlu1 %283  ;;  %v282_v46 = vpop.permute.xlu0 %281  ;;  %v288_v47 = vsel %vm275_vm11, %v286_v43, %v287_v44  ;;  %vm1370_vm10 = vcmp.eq.s32.totalorder %v226_v35, 0  ;;  %v224_v35 = vxor.u32 16, %v1242_v1 }
 0x1c1   : > { %v285_v48 = vsel %vm1267_vm3, %v282_v46, %v284_v45  ;;  %296 = vrot.lane.b32.xlu0 %v288_v47, %s1053_s16  ;;  %294 = vrot.lane.b32.xlu1 %v288_v47, %s1052_s4  ;;  %vm364_vm2 = vmxor %vm1370_vm10, %vm1281_vm6 }
 0x1c2   : > { %v289_v49 = vmin.f32 %v273_v39, %v285_v48  ;;  %v290_v50 = vmax.f32 %v273_v39, %v285_v48  ;;  %vm382_vm7 = vmxor %vm1370_vm10, %vm1258_vm1 }
 0x1c4   : > { %v291_v51 = vsel %vm275_vm11, %v289_v49, %v290_v50  ;;  %v211_v53 = vpop.permute.xlu0 %210  ;;  %vm346_vm11 = vmxor %vm1370_vm10, %vm1319_vm12 }
 0x1c5   : > { %301 = vrot.lane.b32.xlu0 %v291_v51, %s1053_s16  ;;  %299 = vrot.lane.b32.xlu1 %v291_v51, %s1052_s4  ;;  %vm1328_vm14 = vcmp.eq.s32.totalorder %v211_v53, %v212_v55 }
 0x233   : > { %v295_v57 = vpop.permute.xlu1 %294  ;;  %v297_v58 = vpop.permute.xlu0 %296 }
 0x234   : > { %v298_v59 = vsel %vm1328_vm14, %v295_v57, %v297_v58 }
 0x235   : > { %v304_v60 = vmin.f32 %v288_v47, %v298_v59  ;;  %v305_v61 = vmax.f32 %v288_v47, %v298_v59 }
 0x237   : > { %v300_v62 = vpop.permute.xlu1 %299  ;;  %v302_v63 = vpop.permute.xlu0 %301  ;;  %v306_v0 = vsel %vm293_vm15, %v304_v60, %v305_v61 }
 0x238   : > { %v303_v2 = vsel %vm1328_vm14, %v300_v62, %v302_v63  ;;  %314 = vrot.lane.b32.xlu0 %v306_v0, %s1051_s28  ;;  %312 = vrot.lane.b32.xlu1 %v306_v0, %s1049_s20 }
 0x239   : > { %v307_v3 = vmin.f32 %v291_v51, %v303_v2  ;;  %v308_v4 = vmax.f32 %v291_v51, %v303_v2 }
 0x23b   : > { %v309_v5 = vsel %vm293_vm15, %v307_v3, %v308_v4  ;;  %vm347_vm15 = vmxor %vm346_vm11, %vm1050_vm4 }
 0x23c   : > { %319 = vrot.lane.b32.xlu0 %v309_v5, %s1051_s28  ;;  %317 = vrot.lane.b32.xlu1 %v309_v5, %s1049_s20  ;;  %vm400_vm11 = vmxor %vm1370_vm10, %vm1254_vm0 }
 0x2aa   : > { %v313_v8 = vpop.permute.xlu1 %312  ;;  %v315_v9 = vpop.permute.xlu0 %314 }
 0x2ab   : > { %v316_v11 = vsel %vm1290_vm8, %v313_v8, %v315_v9 }
 0x2ac   : > { %v322_v12 = vmin.f32 %v306_v0, %v316_v11  ;;  %v323_v13 = vmax.f32 %v306_v0, %v316_v11 }
 0x2ae   : > { %v318_v14 = vpop.permute.xlu1 %317  ;;  %v320_v15 = vpop.permute.xlu0 %319  ;;  %v324_v16 = vsel %vm311_vm5, %v322_v12, %v323_v13 }
 0x2af   : > { %v321_v17 = vsel %vm1290_vm8, %v318_v14, %v320_v15  ;;  %332 = vrot.lane.b32.xlu0 %v324_v16, %s1048_s14  ;;  %330 = vrot.lane.b32.xlu1 %v324_v16, %s1047_s7 }
 0x2b0   : > { %v325_v18 = vmin.f32 %v309_v5, %v321_v17  ;;  %v326_v19 = vmax.f32 %v309_v5, %v321_v17 }
 0x2b2   : > { %v327_v20 = vsel %vm311_vm5, %v325_v18, %v326_v19  ;;  %vm365_vm5 = vmxor %vm364_vm2, %vm1050_vm4 }
 0x2b3   : > { %337 = vrot.lane.b32.xlu0 %v327_v20, %s1048_s14  ;;  %335 = vrot.lane.b32.xlu1 %v327_v20, %s1047_s7 }
 0x2b7   : > { %216 = vrot.lane.b32.xlu1 %v1242_v1, %s1054_s24 }
 0x321   : > { %v331_v21 = vpop.permute.xlu1 %330  ;;  %v333_v22 = vpop.permute.xlu0 %332 }
 0x322   : > { %v334_v23 = vsel %vm1267_vm3, %v331_v21, %v333_v22 }
 0x323   : > { %v340_v24 = vmin.f32 %v324_v16, %v334_v23  ;;  %v341_v26 = vmax.f32 %v324_v16, %v334_v23 }
 0x325   : > { %v336_v28 = vpop.permute.xlu1 %335  ;;  %v338_v29 = vpop.permute.xlu0 %337  ;;  %v342_v30 = vsel %vm329_vm9, %v340_v24, %v341_v26 }
 0x326   : > { %v339_v31 = vsel %vm1267_vm3, %v336_v28, %v338_v29  ;;  %350 = vrot.lane.b32.xlu1 %v342_v30, %s1055_s17  ;;  %348 = vrot.lane.b32.xlu0 %v342_v30, %s1054_s24 }
 0x327   : > { %v343_v32 = vmin.f32 %v327_v20, %v339_v31  ;;  %v344_v33 = vmax.f32 %v327_v20, %v339_v31 }
 0x329   : > { %v345_v34 = vsel %vm329_vm9, %v343_v32, %v344_v33  ;;  %v217_v36 = vpop.permute.xlu1 %216  ;;  %vm383_vm9 = vmxor %vm382_vm7, %vm1050_vm4  ;;  %v232_v32 = vand.u32 32, %v1242_v1 }
 0x32a   : > { %355 = vrot.lane.b32.xlu1 %v345_v34, %s1055_s17  ;;  %353 = vrot.lane.b32.xlu0 %v345_v34, %s1054_s24  ;;  %vm1379_vm13 = vcmp.eq.s32.totalorder %v217_v36, %v218_v38 }
 0x32b   : > { %vm1434_vm2 = vcmp.eq.s32.totalorder %v232_v32, 0 }
 0x398   : > { %v351_v40 = vpop.permute.xlu1 %350  ;;  %v349_v41 = vpop.permute.xlu0 %348 }
 0x399   : > { %v352_v42 = vsel %vm1379_vm13, %v349_v41, %v351_v40 }
 0x39a   : > { %v358_v43 = vmin.f32 %v342_v30, %v352_v42  ;;  %v359_v44 = vmax.f32 %v342_v30, %v352_v42 }
 0x39c   : > { %v356_v45 = vpop.permute.xlu1 %355  ;;  %v354_v46 = vpop.permute.xlu0 %353  ;;  %v360_v47 = vsel %vm347_vm15, %v358_v43, %v359_v44 }
 0x39d   : > { %v357_v48 = vsel %vm1379_vm13, %v354_v46, %v356_v45  ;;  %368 = vrot.lane.b32.xlu1 %v360_v47, %s1053_s16  ;;  %366 = vrot.lane.b32.xlu0 %v360_v47, %s1052_s4 }
 0x39e   : > { %v361_v49 = vmin.f32 %v345_v34, %v357_v48  ;;  %v362_v50 = vmax.f32 %v345_v34, %v357_v48  ;;  %v1754_v34 = vmov 0 }
 0x39f   : > { %v1755_v34 = vsel %vm1434_vm2, 4294967295, %v1754_v34 }
 0x3a0   : > { %v363_v51 = vsel %vm347_vm15, %v361_v49, %v362_v50  ;;  %vm401_vm15 = vmxor %vm400_vm11, %vm1050_vm4 }
 0x3a1   : > { %373 = vrot.lane.b32.xlu1 %v363_v51, %s1053_s16  ;;  %371 = vrot.lane.b32.xlu0 %v363_v51, %s1052_s4  ;;  %vm436_vm11 = vmxor %vm1434_vm2, %vm1319_vm12 }
 0x40f   : > { %v369_v52 = vpop.permute.xlu1 %368  ;;  %v367_v53 = vpop.permute.xlu0 %366 }
 0x410   : > { %v370_v55 = vsel %vm1328_vm14, %v367_v53, %v369_v52 }
 0x411   : > { %v376_v57 = vmin.f32 %v360_v47, %v370_v55  ;;  %v377_v58 = vmax.f32 %v360_v47, %v370_v55 }
 0x413   : > { %v374_v59 = vpop.permute.xlu1 %373  ;;  %v372_v60 = vpop.permute.xlu0 %371  ;;  %v378_v61 = vsel %vm365_vm5, %v376_v57, %v377_v58 }
 0x414   : > { %v375_v62 = vsel %vm1328_vm14, %v372_v60, %v374_v59  ;;  %386 = vrot.lane.b32.xlu1 %v378_v61, %s1051_s28  ;;  %384 = vrot.lane.b32.xlu0 %v378_v61, %s1049_s20 }
 0x415   : > { %v379_v63 = vmin.f32 %v363_v51, %v375_v62  ;;  %v380_v0 = vmax.f32 %v363_v51, %v375_v62 }
 0x417   : > { %v381_v2 = vsel %vm365_vm5, %v379_v63, %v380_v0  ;;  %vm418_vm5 = vmxor %vm1434_vm2, %vm1370_vm10 }
 0x418   : > { %391 = vrot.lane.b32.xlu1 %v381_v2, %s1051_s28  ;;  %389 = vrot.lane.b32.xlu0 %v381_v2, %s1049_s20 }
 0x486   : > { %v387_v3 = vpop.permute.xlu1 %386  ;;  %v385_v4 = vpop.permute.xlu0 %384 }
 0x487   : > { %v388_v5 = vsel %vm1290_vm8, %v385_v4, %v387_v3 }
 0x488   : > { %v394_v8 = vmin.f32 %v378_v61, %v388_v5  ;;  %v395_v9 = vmax.f32 %v378_v61, %v388_v5 }
 0x48a   : > { %v392_v11 = vpop.permute.xlu1 %391  ;;  %v390_v12 = vpop.permute.xlu0 %389  ;;  %v396_v13 = vsel %vm383_vm9, %v394_v8, %v395_v9 }
 0x48b   : > { %v393_v14 = vsel %vm1290_vm8, %v390_v12, %v392_v11  ;;  %404 = vrot.lane.b32.xlu1 %v396_v13, %s1048_s14  ;;  %402 = vrot.lane.b32.xlu0 %v396_v13, %s1047_s7 }
 0x48c   : > { %v397_v15 = vmin.f32 %v381_v2, %v393_v14  ;;  %v398_v16 = vmax.f32 %v381_v2, %v393_v14 }
 0x48e   : > { %v399_v17 = vsel %vm383_vm9, %v397_v15, %v398_v16  ;;  %vm419_vm9 = vmxor %vm418_vm5, %vm1050_vm4 }
 0x48f   : > { %409 = vrot.lane.b32.xlu1 %v399_v17, %s1048_s14  ;;  %407 = vrot.lane.b32.xlu0 %v399_v17, %s1047_s7  ;;  %vm454_vm5 = vmxor %vm1434_vm2, %vm1281_vm6 }
 0x493   : > { %222 = vrot.lane.b32.xlu0 %v1242_v1, %s1056_s19 }
 0x4fd   : > { %v405_v18 = vpop.permute.xlu1 %404  ;;  %v403_v19 = vpop.permute.xlu0 %402 }
 0x4fe   : > { %v406_v20 = vsel %vm1267_vm3, %v403_v19, %v405_v18 }
 0x4ff   : > { %v412_v21 = vmin.f32 %v396_v13, %v406_v20  ;;  %v413_v22 = vmax.f32 %v396_v13, %v406_v20 }
 0x501   : > { %v410_v23 = vpop.permute.xlu1 %409  ;;  %v408_v24 = vpop.permute.xlu0 %407  ;;  %v414_v26 = vsel %vm401_vm15, %v412_v21, %v413_v22 }
 0x502   : > { %v411_v28 = vsel %vm1267_vm3, %v408_v24, %v410_v23  ;;  %422 = vrot.lane.b32.xlu0 %v414_v26, %s1057_s23  ;;  %420 = vrot.lane.b32.xlu1 %v414_v26, %s1056_s19 }
 0x503   : > { %v415_v29 = vmin.f32 %v399_v17, %v411_v28  ;;  %v416_v30 = vmax.f32 %v399_v17, %v411_v28 }
 0x505   : > { %v417_v31 = vsel %vm401_vm15, %v415_v29, %v416_v30  ;;  %v223_v33 = vpop.permute.xlu0 %222  ;;  %vm437_vm15 = vmxor %vm436_vm11, %vm1050_vm4 }
 0x506   : > { %427 = vrot.lane.b32.xlu0 %v417_v31, %s1057_s23  ;;  %425 = vrot.lane.b32.xlu1 %v417_v31, %s1056_s19  ;;  %vm1443_vm7 = vcmp.eq.s32.totalorder %v223_v33, %v224_v35  ;;  %vm472_vm11 = vmxor %vm1434_vm2, %vm1258_vm1 }
 0x574   : > { %v421_v38 = vpop.permute.xlu1 %420  ;;  %v423_v40 = vpop.permute.xlu0 %422 }
 0x575   : > { %v424_v41 = vsel %vm1443_vm7, %v421_v38, %v423_v40 }
 0x576   : > { %v430_v42 = vmin.f32 %v414_v26, %v424_v41  ;;  %v431_v43 = vmax.f32 %v414_v26, %v424_v41 }
 0x578   : > { %v426_v44 = vpop.permute.xlu1 %425  ;;  %v428_v45 = vpop.permute.xlu0 %427  ;;  %v432_v46 = vsel %vm419_vm9, %v430_v42, %v431_v43 }
 0x579   : > { %v429_v47 = vsel %vm1443_vm7, %v426_v44, %v428_v45  ;;  %440 = vrot.lane.b32.xlu0 %v432_v46, %s1055_s17  ;;  %438 = vrot.lane.b32.xlu1 %v432_v46, %s1054_s24 }
 0x57a   : > { %v433_v48 = vmin.f32 %v417_v31, %v429_v47  ;;  %v434_v49 = vmax.f32 %v417_v31, %v429_v47  ;;  %v234_v47 = vand.u32 64, %v1242_v1 }
 0x57c   : > { %v435_v50 = vsel %vm419_vm9, %v433_v48, %v434_v49  ;;  %vm455_vm9 = vmxor %vm454_vm5, %vm1050_vm4 }
 0x57d   : > { %445 = vrot.lane.b32.xlu0 %v435_v50, %s1055_s17  ;;  %443 = vrot.lane.b32.xlu1 %v435_v50, %s1054_s24  ;;  %vm490_vm5 = vmxor %vm1434_vm2, %vm1254_vm0 }
 0x5eb   : > { %v439_v51 = vpop.permute.xlu1 %438  ;;  %v441_v52 = vpop.permute.xlu0 %440 }
 0x5ec   : > { %v442_v53 = vsel %vm1379_vm13, %v439_v51, %v441_v52 }
 0x5ed   : > { %v448_v55 = vmin.f32 %v432_v46, %v442_v53  ;;  %v449_v57 = vmax.f32 %v432_v46, %v442_v53 }
 0x5ef   : > { %v444_v58 = vpop.permute.xlu1 %443  ;;  %v446_v59 = vpop.permute.xlu0 %445  ;;  %v450_v60 = vsel %vm437_vm15, %v448_v55, %v449_v57 }
 0x5f0   : > { %v447_v61 = vsel %vm1379_vm13, %v444_v58, %v446_v59  ;;  %458 = vrot.lane.b32.xlu0 %v450_v60, %s1053_s16  ;;  %456 = vrot.lane.b32.xlu1 %v450_v60, %s1052_s4 }
 0x5f1   : > { %v451_v62 = vmin.f32 %v435_v50, %v447_v61  ;;  %v452_v63 = vmax.f32 %v435_v50, %v447_v61  ;;  %v230_v50 = vxor.u32 32, %v1242_v1 }
 0x5f3   : > { %v453_v0 = vsel %vm437_vm15, %v451_v62, %v452_v63  ;;  %vm473_vm15 = vmxor %vm472_vm11, %vm1050_vm4  ;;  %vm1511_vm11 = vcmp.eq.s32.totalorder %v234_v47, 0 }
 0x5f4   : > { %463 = vrot.lane.b32.xlu0 %v453_v0, %s1053_s16  ;;  %461 = vrot.lane.b32.xlu1 %v453_v0, %s1052_s4 }
 0x662   : > { %v457_v2 = vpop.permute.xlu1 %456  ;;  %v459_v3 = vpop.permute.xlu0 %458 }
 0x663   : > { %v460_v4 = vsel %vm1328_vm14, %v457_v2, %v459_v3 }
 0x664   : > { %v466_v5 = vmin.f32 %v450_v60, %v460_v4  ;;  %v467_v8 = vmax.f32 %v450_v60, %v460_v4 }
 0x666   : > { %v462_v9 = vpop.permute.xlu1 %461  ;;  %v464_v11 = vpop.permute.xlu0 %463  ;;  %v468_v12 = vsel %vm455_vm9, %v466_v5, %v467_v8 }
 0x667   : > { %v465_v13 = vsel %vm1328_vm14, %v462_v9, %v464_v11  ;;  %476 = vrot.lane.b32.xlu0 %v468_v12, %s1051_s28  ;;  %474 = vrot.lane.b32.xlu1 %v468_v12, %s1049_s20 }
 0x668   : > { %v469_v14 = vmin.f32 %v453_v0, %v465_v13  ;;  %v470_v15 = vmax.f32 %v453_v0, %v465_v13 }
 0x66a   : > { %v471_v16 = vsel %vm455_vm9, %v469_v14, %v470_v15  ;;  %vm491_vm9 = vmxor %vm490_vm5, %vm1050_vm4 }
 0x66b   : > { %481 = vrot.lane.b32.xlu0 %v471_v16, %s1051_s28  ;;  %479 = vrot.lane.b32.xlu1 %v471_v16, %s1049_s20 }
 0x6d9   : > { %v475_v17 = vpop.permute.xlu1 %474  ;;  %v477_v18 = vpop.permute.xlu0 %476 }
 0x6da   : > { %v478_v19 = vsel %vm1290_vm8, %v475_v17, %v477_v18 }
 0x6db   : > { %v484_v20 = vmin.f32 %v468_v12, %v478_v19  ;;  %v485_v21 = vmax.f32 %v468_v12, %v478_v19 }
 0x6dd   : > { %v480_v22 = vpop.permute.xlu1 %479  ;;  %v482_v23 = vpop.permute.xlu0 %481  ;;  %v486_v24 = vsel %vm473_vm15, %v484_v20, %v485_v21 }
 0x6de   : > { %v483_v26 = vsel %vm1290_vm8, %v480_v22, %v482_v23  ;;  %494 = vrot.lane.b32.xlu0 %v486_v24, %s1048_s14  ;;  %492 = vrot.lane.b32.xlu1 %v486_v24, %s1047_s7 }
 0x6df   : > { %v487_v28 = vmin.f32 %v471_v16, %v483_v26  ;;  %v488_v29 = vmax.f32 %v471_v16, %v483_v26 }
 0x6e1   : > { %v489_v30 = vsel %vm473_vm15, %v487_v28, %v488_v29  ;;  %vm508_vm15 = vmxor %vm1511_vm11, %vm1434_vm2 }
 0x6e2   : > { %499 = vrot.lane.b32.xlu0 %v489_v30, %s1048_s14  ;;  %497 = vrot.lane.b32.xlu1 %v489_v30, %s1047_s7 }
 0x6e6   : > { %228 = vrot.lane.b32.xlu1 %v1242_v1, %s1058_s25 }
 0x750   : > { %v493_v31 = vpop.permute.xlu1 %492  ;;  %v495_v32 = vpop.permute.xlu0 %494 }
 0x751   : > { %v496_v33 = vsel %vm1267_vm3, %v493_v31, %v495_v32 }
 0x752   : > { %v502_v35 = vmin.f32 %v486_v24, %v496_v33  ;;  %v503_v38 = vmax.f32 %v486_v24, %v496_v33 }
 0x754   : > { %v498_v40 = vpop.permute.xlu1 %497  ;;  %v500_v41 = vpop.permute.xlu0 %499  ;;  %v504_v42 = vsel %vm491_vm9, %v502_v35, %v503_v38 }
 0x755   : > { %v501_v43 = vsel %vm1267_vm3, %v498_v40, %v500_v41  ;;  %512 = vrot.lane.b32.xlu1 %v504_v42, %s1059_s26  ;;  %510 = vrot.lane.b32.xlu0 %v504_v42, %s1058_s25 }
 0x756   : > { %v505_v44 = vmin.f32 %v489_v30, %v501_v43  ;;  %v506_v45 = vmax.f32 %v489_v30, %v501_v43 }
 0x758   : > { %v507_v46 = vsel %vm491_vm9, %v505_v44, %v506_v45  ;;  %v229_v48 = vpop.permute.xlu1 %228  ;;  %vm509_vm9 = vmxor %vm508_vm15, %vm1050_vm4 }
 0x759   : > { %517 = vrot.lane.b32.xlu1 %v507_v46, %s1059_s26  ;;  %515 = vrot.lane.b32.xlu0 %v507_v46, %s1058_s25  ;;  %vm1520_vm5 = vcmp.eq.s32.totalorder %v229_v48, %v230_v50  ;;  %vm526_vm15 = vmxor %vm1511_vm11, %vm1370_vm10 }
 0x75a   : > { %vm527_vm2 = vmxor %vm526_vm15, %vm1050_vm4 }
 0x7c7   : > { %v513_v52 = vpop.permute.xlu1 %512  ;;  %v511_v53 = vpop.permute.xlu0 %510 }
 0x7c8   : > { %v514_v55 = vsel %vm1520_vm5, %v511_v53, %v513_v52 }
 0x7c9   : > { %v520_v57 = vmin.f32 %v504_v42, %v514_v55  ;;  %v521_v58 = vmax.f32 %v504_v42, %v514_v55 }
 0x7cb   : > { %v518_v59 = vpop.permute.xlu1 %517  ;;  %v516_v1 = vpop.permute.xlu0 %515  ;;  %v522_v60 = vsel %vm509_vm9, %v520_v57, %v521_v58 }
 0x7cc   : > { %v519_v61 = vsel %vm1520_vm5, %v516_v1, %v518_v59  ;;  %530 = vrot.lane.b32.xlu1 %v522_v60, %s1057_s23  ;;  %528 = vrot.lane.b32.xlu0 %v522_v60, %s1056_s19 }
 0x7cd   : > { %v523_v62 = vmin.f32 %v507_v46, %v519_v61  ;;  %v524_v63 = vmax.f32 %v507_v46, %v519_v61 }
 0x7cf   : > { %v525_v0 = vsel %vm509_vm9, %v523_v62, %v524_v63  ;;  %vm544_vm9 = vmxor %vm1511_vm11, %vm1319_vm12 }
 0x7d0   : > { %535 = vrot.lane.b32.xlu1 %v525_v0, %s1057_s23  ;;  %533 = vrot.lane.b32.xlu0 %v525_v0, %s1056_s19  ;;  %vm545_vm15 = vmxor %vm544_vm9, %vm1050_vm4 }
 0x83e   : > { %v531_v2 = vpop.permute.xlu1 %530  ;;  %v529_v3 = vpop.permute.xlu0 %528 }
 0x83f   : > { %v532_v4 = vsel %vm1443_vm7, %v529_v3, %v531_v2 }
 0x840   : > { %v538_v5 = vmin.f32 %v522_v60, %v532_v4  ;;  %v539_v8 = vmax.f32 %v522_v60, %v532_v4 }
 0x842   : > { %v536_v9 = vpop.permute.xlu1 %535  ;;  %v534_v11 = vpop.permute.xlu0 %533  ;;  %v540_v12 = vsel %vm527_vm2, %v538_v5, %v539_v8 }
 0x843   : > { %v537_v13 = vsel %vm1443_vm7, %v534_v11, %v536_v9  ;;  %548 = vrot.lane.b32.xlu1 %v540_v12, %s1055_s17  ;;  %546 = vrot.lane.b32.xlu0 %v540_v12, %s1054_s24 }
 0x844   : > { %v541_v14 = vmin.f32 %v525_v0, %v537_v13  ;;  %v542_v15 = vmax.f32 %v525_v0, %v537_v13 }
 0x846   : > { %v543_v16 = vsel %vm527_vm2, %v541_v14, %v542_v15  ;;  %vm562_vm2 = vmxor %vm1511_vm11, %vm1281_vm6 }
 0x847   : > { %553 = vrot.lane.b32.xlu1 %v543_v16, %s1055_s17  ;;  %551 = vrot.lane.b32.xlu0 %v543_v16, %s1054_s24  ;;  %vm563_vm9 = vmxor %vm562_vm2, %vm1050_vm4 }
 0x8b5   : > { %v549_v17 = vpop.permute.xlu1 %548  ;;  %v547_v18 = vpop.permute.xlu0 %546 }
 0x8b6   : > { %v550_v19 = vsel %vm1379_vm13, %v547_v18, %v549_v17 }
 0x8b7   : > { %v556_v20 = vmin.f32 %v540_v12, %v550_v19  ;;  %v557_v21 = vmax.f32 %v540_v12, %v550_v19 }
 0x8b9   : > { %v554_v22 = vpop.permute.xlu1 %553  ;;  %v552_v23 = vpop.permute.xlu0 %551  ;;  %v558_v24 = vsel %vm545_vm15, %v556_v20, %v557_v21 }
 0x8ba   : > { %v555_v26 = vsel %vm1379_vm13, %v552_v23, %v554_v22  ;;  %566 = vrot.lane.b32.xlu1 %v558_v24, %s1053_s16  ;;  %564 = vrot.lane.b32.xlu0 %v558_v24, %s1052_s4 }
 0x8bb   : > { %v559_v28 = vmin.f32 %v543_v16, %v555_v26  ;;  %v560_v29 = vmax.f32 %v543_v16, %v555_v26 }
 0x8bd   : > { %v561_v30 = vsel %vm545_vm15, %v559_v28, %v560_v29  ;;  %vm580_vm15 = vmxor %vm1511_vm11, %vm1258_vm1 }
 0x8be   : > { %571 = vrot.lane.b32.xlu1 %v561_v30, %s1053_s16  ;;  %569 = vrot.lane.b32.xlu0 %v561_v30, %s1052_s4  ;;  %vm581_vm2 = vmxor %vm580_vm15, %vm1050_vm4 }
 0x92c   : > { %v567_v31 = vpop.permute.xlu1 %566  ;;  %v565_v32 = vpop.permute.xlu0 %564 }
 0x92d   : > { %v568_v33 = vsel %vm1328_vm14, %v565_v32, %v567_v31 }
 0x92e   : > { %v574_v35 = vmin.f32 %v558_v24, %v568_v33  ;;  %v575_v38 = vmax.f32 %v558_v24, %v568_v33 }
 0x930   : > { %v572_v40 = vpop.permute.xlu1 %571  ;;  %v570_v41 = vpop.permute.xlu0 %569  ;;  %v576_v42 = vsel %vm563_vm9, %v574_v35, %v575_v38 }
 0x931   : > { %v573_v43 = vsel %vm1328_vm14, %v570_v41, %v572_v40  ;;  %584 = vrot.lane.b32.xlu1 %v576_v42, %s1051_s28  ;;  %582 = vrot.lane.b32.xlu0 %v576_v42, %s1049_s20 }
 0x932   : > { %v577_v44 = vmin.f32 %v561_v30, %v573_v43  ;;  %v578_v45 = vmax.f32 %v561_v30, %v573_v43 }
 0x934   : > { %v579_v46 = vsel %vm563_vm9, %v577_v44, %v578_v45  ;;  %vm598_vm9 = vmxor %vm1511_vm11, %vm1254_vm0 }
 0x935   : > { %589 = vrot.lane.b32.xlu1 %v579_v46, %s1051_s28  ;;  %587 = vrot.lane.b32.xlu0 %v579_v46, %s1049_s20  ;;  %vm599_vm15 = vmxor %vm598_vm9, %vm1050_vm4  ;;  %vm1762_vm4 = vnez %v1755_v34 }
 0x9a3   : > { %v585_v47 = vpop.permute.xlu1 %584  ;;  %v583_v48 = vpop.permute.xlu0 %582 }
 0x9a4   : > { %v586_v50 = vsel %vm1290_vm8, %v583_v48, %v585_v47 }
 0x9a5   : > { %v592_v52 = vmin.f32 %v576_v42, %v586_v50  ;;  %v593_v53 = vmax.f32 %v576_v42, %v586_v50 }
 0x9a7   : > { %v590_v55 = vpop.permute.xlu1 %589  ;;  %v588_v57 = vpop.permute.xlu0 %587  ;;  %v594_v58 = vsel %vm581_vm2, %v592_v52, %v593_v53 }
 0x9a8   : > { %v591_v59 = vsel %vm1290_vm8, %v588_v57, %v590_v55  ;;  %602 = vrot.lane.b32.xlu1 %v594_v58, %s1048_s14  ;;  %600 = vrot.lane.b32.xlu0 %v594_v58, %s1047_s7 }
 0x9a9   : > { %v595_v1 = vmin.f32 %v579_v46, %v591_v59  ;;  %v596_v60 = vmax.f32 %v579_v46, %v591_v59 }
 0x9ab   : > { %v597_v61 = vsel %vm581_vm2, %v595_v1, %v596_v60 }
 0x9ac   : > { %607 = vrot.lane.b32.xlu1 %v597_v61, %s1048_s14  ;;  %605 = vrot.lane.b32.xlu0 %v597_v61, %s1047_s7 }
 0xa1a   : > { %v603_v62 = vpop.permute.xlu1 %602  ;;  %v601_v63 = vpop.permute.xlu0 %600 }
 0xa1b   : > { %v604_v0 = vsel %vm1267_vm3, %v601_v63, %v603_v62 }
 0xa1c   : > { %v610_v2 = vmin.f32 %v594_v58, %v604_v0  ;;  %v611_v3 = vmax.f32 %v594_v58, %v604_v0 }
 0xa1e   : > { %v608_v4 = vpop.permute.xlu1 %607  ;;  %v606_v5 = vpop.permute.xlu0 %605  ;;  %v612_v8 = vsel %vm599_vm15, %v610_v2, %v611_v3 }
 0xa1f   : > { %v609_v9 = vsel %vm1267_vm3, %v606_v5, %v608_v4  ;;  %616 = vrot.lane.b32.xlu0 %v612_v8, %s1060_s27 }
 0xa20   : > { %v613_v11 = vmin.f32 %v597_v61, %v609_v9  ;;  %v614_v12 = vmax.f32 %v597_v61, %v609_v9 }
 0xa22   : > { %v615_v13 = vsel %vm599_vm15, %v613_v11, %v614_v12 }
 0xa23   : > { %618 = vrot.lane.b32.xlu1 %v615_v13, %s1060_s27 }
 0xa91   : > { %v617_v14 = vpop.permute.xlu0 %616 }
 0xa92   : > { %v620_v15 = vmin.f32 %v612_v8, %v617_v14  ;;  %v621_v16 = vmax.f32 %v612_v8, %v617_v14 }
 0xa94   : > { %v622_v17 = vsel %vm1511_vm11, %v620_v15, %v621_v16 }
 0xa95   : > { %v619_v18 = vpop.permute.xlu1 %618  ;;  %628 = vrot.lane.b32.xlu1 %v622_v17, %s1059_s26  ;;  %626 = vrot.lane.b32.xlu0 %v622_v17, %s1058_s25 }
 0xa96   : > { %v623_v19 = vmin.f32 %v615_v13, %v619_v18  ;;  %v624_v20 = vmax.f32 %v615_v13, %v619_v18 }
 0xa98   : > { %v625_v21 = vsel %vm1511_vm11, %v623_v19, %v624_v20 }
 0xa99   : > { %633 = vrot.lane.b32.xlu1 %v625_v21, %s1059_s26  ;;  %631 = vrot.lane.b32.xlu0 %v625_v21, %s1058_s25 }
 0xb07   : > { %v629_v22 = vpop.permute.xlu1 %628  ;;  %v627_v23 = vpop.permute.xlu0 %626 }
 0xb08   : > { %v630_v24 = vsel %vm1520_vm5, %v627_v23, %v629_v22 }
 0xb09   : > { %v636_v26 = vmin.f32 %v622_v17, %v630_v24  ;;  %v637_v28 = vmax.f32 %v622_v17, %v630_v24 }
 0xb0b   : > { %v634_v29 = vpop.permute.xlu1 %633  ;;  %v632_v30 = vpop.permute.xlu0 %631  ;;  %v638_v31 = vsel %vm1762_vm4, %v636_v26, %v637_v28 }
 0xb0c   : > { %v635_v49 = vsel %vm1520_vm5, %v632_v30, %v634_v29  ;;  %644 = vrot.lane.b32.xlu1 %v638_v31, %s1057_s23  ;;  %642 = vrot.lane.b32.xlu0 %v638_v31, %s1056_s19 }
 0xb0d   : > { %v639_v32 = vmin.f32 %v625_v21, %v635_v49  ;;  %v640_v33 = vmax.f32 %v625_v21, %v635_v49 }
 0xb0f   : > { %v641_v35 = vsel %vm1762_vm4, %v639_v32, %v640_v33 }
 0xb10   : > { %649 = vrot.lane.b32.xlu1 %v641_v35, %s1057_s23  ;;  %647 = vrot.lane.b32.xlu0 %v641_v35, %s1056_s19 }
 0xb7e   : > { %v645_v38 = vpop.permute.xlu1 %644  ;;  %v643_v40 = vpop.permute.xlu0 %642 }
 0xb7f   : > { %v646_v41 = vsel %vm1443_vm7, %v643_v40, %v645_v38 }
 0xb80   : > { %v652_v51 = vmin.f32 %v638_v31, %v646_v41  ;;  %v653_v42 = vmax.f32 %v638_v31, %v646_v41 }
 0xb82   : > { %v650_v43 = vpop.permute.xlu1 %649  ;;  %v648_v44 = vpop.permute.xlu0 %647  ;;  %v654_v45 = vsel %vm1370_vm10, %v652_v51, %v653_v42 }
 0xb83   : > { %v651_v34 = vsel %vm1443_vm7, %v648_v44, %v650_v43  ;;  %660 = vrot.lane.b32.xlu1 %v654_v45, %s1055_s17  ;;  %658 = vrot.lane.b32.xlu0 %v654_v45, %s1054_s24 }
 0xb84   : > { %v655_v46 = vmin.f32 %v641_v35, %v651_v34  ;;  %v656_v47 = vmax.f32 %v641_v35, %v651_v34 }
 0xb86   : > { %v657_v48 = vsel %vm1370_vm10, %v655_v46, %v656_v47 }
 0xb87   : > { %665 = vrot.lane.b32.xlu1 %v657_v48, %s1055_s17  ;;  %663 = vrot.lane.b32.xlu0 %v657_v48, %s1054_s24 }
 0xbf5   : > { %v661_v50 = vpop.permute.xlu1 %660  ;;  %v659_v52 = vpop.permute.xlu0 %658 }
 0xbf6   : > { %v662_v53 = vsel %vm1379_vm13, %v659_v52, %v661_v50 }
 0xbf7   : > { %v668_v36 = vmin.f32 %v654_v45, %v662_v53  ;;  %v669_v55 = vmax.f32 %v654_v45, %v662_v53 }
 0xbf9   : > { %v666_v57 = vpop.permute.xlu1 %665  ;;  %v664_v58 = vpop.permute.xlu0 %663  ;;  %v670_v59 = vsel %vm1319_vm12, %v668_v36, %v669_v55 }
 0xbfa   : > { %v667_v37 = vsel %vm1379_vm13, %v664_v58, %v666_v57  ;;  %676 = vrot.lane.b32.xlu1 %v670_v59, %s1053_s16  ;;  %674 = vrot.lane.b32.xlu0 %v670_v59, %s1052_s4 }
 0xbfb   : > { %v671_v1 = vmin.f32 %v657_v48, %v667_v37  ;;  %v672_v60 = vmax.f32 %v657_v48, %v667_v37 }
 0xbfd   : > { %v673_v61 = vsel %vm1319_vm12, %v671_v1, %v672_v60 }
 0xbfe   : > { %681 = vrot.lane.b32.xlu1 %v673_v61, %s1053_s16  ;;  %679 = vrot.lane.b32.xlu0 %v673_v61, %s1052_s4  ;;  %s979_s4 = scalar_lea.vmem %s978_s6, 256 }
 0xc6c   : > { %v677_v62 = vpop.permute.xlu1 %676  ;;  %v675_v63 = vpop.permute.xlu0 %674 }
 0xc6d   : > { %v678_v0 = vsel %vm1328_vm14, %v675_v63, %v677_v62 }
 0xc6e   : > { %v684_v39 = vmin.f32 %v670_v59, %v678_v0  ;;  %v685_v2 = vmax.f32 %v670_v59, %v678_v0 }
 0xc70   : > { %v682_v3 = vpop.permute.xlu1 %681  ;;  %v680_v4 = vpop.permute.xlu0 %679  ;;  %v686_v5 = vsel %vm1281_vm6, %v684_v39, %v685_v2 }
 0xc71   : > { %v683_v54 = vsel %vm1328_vm14, %v680_v4, %v682_v3  ;;  %692 = vrot.lane.b32.xlu1 %v686_v5, %s1051_s28  ;;  %690 = vrot.lane.b32.xlu0 %v686_v5, %s1049_s20 }
 0xc72   : > { %v687_v8 = vmin.f32 %v673_v61, %v683_v54  ;;  %v688_v9 = vmax.f32 %v673_v61, %v683_v54 }
 0xc74   : > { %v689_v11 = vsel %vm1281_vm6, %v687_v8, %v688_v9 }
 0xc75   : > { %697 = vrot.lane.b32.xlu1 %v689_v11, %s1051_s28  ;;  %695 = vrot.lane.b32.xlu0 %v689_v11, %s1049_s20  ;;  %s727_s20 = scalar_lea.sflag [#allocation4], %s1225_s5  ;;  %s973_s28 = scalar_lea.vmem %s1677_s3, 128 }
 0xc76   : > { %p974_p13 = scmp.ne.s32.totalorder %s1677_s3, %s973_s28  ;;  %p981_p9 = scmp.lt.s32.totalorder %s979_s4, %s973_s28 }
 0xc78   : > { %p975_p7 = pnand %p974_p13, %p1763_p3  ;;  %p982_p0 = por %p981_p9, %p980_p8 }
 0xc7a   : > { %p976_p5 = pneg %p975_p7 }
 0xc7c   : > { %p983_p1 = pnand %p982_p0, %p976_p5 }
 0xce3   : > { %v693_v12 = vpop.permute.xlu1 %692  ;;  %v691_v13 = vpop.permute.xlu0 %690 }
 0xce4   : > { %v694_v14 = vsel %vm1290_vm8, %v691_v13, %v693_v12 }
 0xce5   : > { %v700_v56 = vmin.f32 %v686_v5, %v694_v14  ;;  %v701_v15 = vmax.f32 %v686_v5, %v694_v14 }
 0xce7   : > { %v698_v16 = vpop.permute.xlu1 %697  ;;  %v696_v17 = vpop.permute.xlu0 %695  ;;  %v702_v18 = vsel %vm1258_vm1, %v700_v56, %v701_v15 }
 0xce8   : > { %v699_v25 = vsel %vm1290_vm8, %v696_v17, %v698_v16  ;;  %708 = vrot.lane.b32.xlu1 %v702_v18, %s1048_s14  ;;  %706 = vrot.lane.b32.xlu0 %v702_v18, %s1047_s7 }
 0xce9   : > { %v703_v19 = vmin.f32 %v689_v11, %v699_v25  ;;  %v704_v20 = vmax.f32 %v689_v11, %v699_v25 }
 0xceb   : > { %v705_v21 = vsel %vm1258_vm1, %v703_v19, %v704_v20 }
 0xcec   : > { %713 = vrot.lane.b32.xlu1 %v705_v21, %s1048_s14  ;;  %711 = vrot.lane.b32.xlu0 %v705_v21, %s1047_s7  ;;  %s1675_s14 = scalar_lea.hbm %s1721_s2, %s845_s8 }
 0xd5a   : > { %v709_v22 = vpop.permute.xlu1 %708  ;;  %v707_v23 = vpop.permute.xlu0 %706 }
 0xd5b   : > { %v710_v27 = vsel %vm1267_vm3, %v707_v23, %v709_v22 }
 0xd5c   : > { %v716_v24 = vmin.f32 %v702_v18, %v710_v27  ;;  %v717_v26 = vmax.f32 %v702_v18, %v710_v27 }
 0xd5e   : > { %v714_v28 = vpop.permute.xlu1 %713  ;;  %v712_v29 = vpop.permute.xlu0 %711  ;;  %v718_v49 = vsel %vm1254_vm0, %v716_v24, %v717_v26 }
 0xd5f   : > { %v715_v7 = vsel %vm1267_vm3, %v712_v29, %v714_v28 }
 0xd60   : > { %v719_v30 = vmin.f32 %v705_v21, %v715_v7  ;;  %v720_v31 = vmax.f32 %v705_v21, %v715_v7 }
 0xd62   : > { %v721_v32 = vsel %vm1254_vm0, %v719_v30, %v720_v31 }
 0xd63   : > { %v722_v33 = vsub.f32 %v718_v49, %v721_v32 }
 0xd65   : > { %v723_v35 = vand.u32 2147483647, %v722_v33 }
 0xd67   : > { %725 = vst [vmem:[%s195_s30] sm:$0xff] %v723_v35 }
 0xd68   : > { %986 = shalt.err (!%p983_p1)
}
 0xd69   : > { %s987_s5 = scalar_lea.hbm %s1675_s14, 128  ;;  %s991_s17 = scalar_lea.hbm %s1721_s2, 256 }
 0xd6a   : > { %p988_p11 = scmp.ne.s32.totalorder %s1675_s14, %s987_s5  ;;  %p992_p4 = scmp.lt.u32.totalorder %s1675_s14, %s1721_s2 }
 0xd6b   : > { %p993_p10 = scmp.lt.u32.totalorder %s991_s17, %s987_s5  ;;  %p995_p13 = scmp.lt.u32.totalorder %s987_s5, %s1675_s14 }
 0xd6c   : > { %p989_p12 = pnand %p988_p11, %p1763_p3 }
 0xd6d   : > { %p994_p6 = por %p993_p10, %p992_p4 }
 0xd6e   : > { %p990_p2 = pneg %p989_p12 }
 0xd6f   : > { %p996_p7 = por %p995_p13, %p994_p6 }
 0xd71   : > { %p997_p5 = pnand %p996_p7, %p990_p2 }
 0xd73   : > { %1000 = shalt.err (!%p997_p5)
}
 0xd74   : > { %852 = dma.vmem_to_hbm [thread:$0]  (%p1763_p3), %s1677_s3, 128, %s1675_s14, %s727_s20  }
 0xd75 PF: > { %s752_s25 = sand.u32 1, %s1031_s9   ;;  %p1764_p8 = scmp.ne.s32.totalorder %s1729_s22, 0 }
 0xd76   : > { %p1765_p9 = scmp.ge.s32.totalorder %s1043_s12, 2  ;;  %s753_s26 = scalar_lea.sflag [#allocation4], %s752_s25 }
 0xd78   : > { %p862_p0 = pnand %p1765_p9, %p1764_p8 }
 0xd7a   : > { %1026 = dma.done.wait (!%p862_p0), %s753_s26, 128  }
 0xd7b   : > { %1028 = vsyncadd (!%p862_p0), %s753_s26, 4294967168  ;;  %p18_p1 = scmp.ge.s32.totalorder %s1102_s15, 4   ;;  %s1766_s9 = smov %s1035_s10 }
 0xd7c   : > { %s1767_s10 = smov %s1039_s11  ;;  %s1768_s11 = smov %s1114_s18 }
 0xd7d   : > { %s1769_s12 = smov %s1102_s15  ;;  %20 = sbr.rel (!%p18_p1) target bundleno = 7 (0x7), region = 86 }
 0xd84   :  { %758 = vsyncpa [#allocation3], 1 }
 0xd85   :  { %760 = vsyncpa [#allocation3 + $0x1], 1 }
 0xd86   :  { %761 = vsyncpa [#allocation6], 1 }
 0xd87   :  { %763 = vsyncpa [#allocation6 + $0x1], 1 }
 0xd88   :  { %764 = vsyncpa [#allocation4], 1 }
 0xd89   :  { %766 = vsyncpa [#allocation4 + $0x1], 1 }

</bundles_post_ra>
